<compile_context>
chip_gen: v6e
topology: v6e:2x2x1
jax: 0.10.0
libtpu: 0.0.40
codegen_flags: <defaults>
</compile_context>

<pallas_src>
import functools

import jax
import jax.numpy as jnp
from jax.experimental import pallas as pl
from jax.experimental.pallas import tpu as pltpu


def _round_up(v, m):
    return ((v + m - 1) // m) * m


def _vmem_capacity_bytes():
    try:
        return int(pltpu.get_tpu_info().vmem_capacity_bytes)
    except Exception:
        return 64 * 1024 * 1024  # conservative fallback (v7x per-TC VMEM)


def _block_footprint_bytes(th, *, W, C, ph, pwE, itemsize, fold_w):
    """Estimated VMEM for one grid step: double-buffered in/out/weight blocks,
    the relayout scratch, and f32 temporaries (z and the loaded x block)."""
    r8 = lambda v: _round_up(v, 8)
    r128 = lambda v: _round_up(v, 128)
    x_blk = r8(th * W) * r128(C) * itemsize * 2               # input, 2 buffers
    if fold_w:
        out_blk = r8(th) * r128(ph * W * pwE) * itemsize * 2  # lane-dense out
        zbuf = th * r8(W) * r128(pwE) * itemsize               # relayout scratch
    else:
        out_blk = th * ph * r8(W) * r128(pwE) * itemsize * 2
        zbuf = 0
    w_blk = ph * r8(C) * r128(pwE) * itemsize * 2
    b_blk = 8 * r128(pwE) * 4 * 2
    tmps = r8(th * W) * (2 * r128(pwE) + r128(C)) * 4          # f32 z (x2) + x
    return x_blk + out_blk + zbuf + w_blk + b_blk + tmps


def _choose_tile_h(H, W, D, budget, footprint):
    """Largest th dividing H that satisfies the (8,128) block rules and fits
    the VMEM budget (bigger tiles amortize the ~0.35us per-step overhead)."""
    cands = []
    for t in range(1, H + 1):
        if H % t:
            continue
        out_ok = (t % 8 == 0) or (t == H)                    # out block 2nd-minor
        in_ok = ((t * W) % 8 == 0) or (t == H and D == 1)    # x block 2nd-minor
        if out_ok and in_ok:
            cands.append(t)
    if not cands:
        # TODO(synk): shapes with odd W and H*W % 8 != 0 (and D > 1) need a
        # padded / 5-D input path; not implemented here.
        raise NotImplementedError(
            f"PatchEmbed3D Pallas kernel: no legal H tile for H={H}, W={W}, D={D}")
    fitting = [t for t in cands if footprint(t) <= budget]
    return max(fitting) if fitting else min(cands)


def _patch_embed_kernel(x_ref, w_ref, b_ref, o_ref, *scratch,
                        ph, th, W, pwE, fold_w):
    # x_ref : (th*W, C)         input rows (h, w) x channels, native dtype
    # w_ref : (ph, C, pw*E)     weight slice for the current kd grid index
    # b_ref : (1, pw*E)         bias (f32, already tiled over pw)
    # o_ref : (th, ph*W*pw*E)   if fold_w  (lane-dense trailing dim)
    #         (th, ph, W, pw*E) otherwise  (pw*E already a multiple of 128)
    # scratch: (zbuf,) with zbuf (th, W, pw*E), only in the fold_w path.
    xv = x_ref[...]          # no f32 upcast: MXU consumes bf16/f32 natively
    bias = b_ref[...]        # (1, pw*E) f32
    for kh in range(ph):     # small static unroll; pd lives on the grid
        wk = w_ref[kh]                                           # (C, pw*E)
        z = jnp.dot(xv, wk, preferred_element_type=jnp.float32) + bias
        z3 = z.reshape(th, W, pwE)   # free: splits the sublane dim only
        if fold_w:
            zbuf = scratch[0]
            zbuf[...] = z3.astype(zbuf.dtype)
            for w in range(W):       # lane-offset stores into the dense block
                off = (kh * W + w) * pwE
                o_ref[:, off:off + pwE] = zbuf[:, w, :]
        else:
            o_ref[:, kh, :, :] = z3.astype(o_ref.dtype)


def _patch_embed_pallas(x, weight, bias, patch_size, embed_dim):
    B, C, D, H, W = x.shape
    pd, ph, pw = patch_size
    E = embed_dim
    pwE = pw * E
    itemsize = jnp.dtype(x.dtype).itemsize

    # Lane-dense output path: fold (kh, w, kw, e) into one full trailing dim
    # when pw*E is not already a multiple of 128 (cap the per-step unroll).
    fold_w = (pwE % 128 != 0) and (ph * W <= 512)

    vmem_cap = _vmem_capacity_bytes()
    budget = max(min(int(vmem_cap * 0.72), vmem_cap - (8 << 20)), 24 << 20)
    footprint = functools.partial(_block_footprint_bytes, W=W, C=C, ph=ph,
                                  pwE=pwE, itemsize=itemsize, fold_w=fold_w)
    th = _choose_tile_h(H, W, D, budget, footprint)
    nT = H // th
    vmem_limit = min(int(vmem_cap * 0.9),
                     max(budget, footprint(th) + (8 << 20)))

    # ---- wrapper-side glue (tiny next to the pd*ph*pw*E/C-times-larger out) ----
    x3 = jnp.transpose(x, (0, 2, 3, 4, 1)).reshape(B, D * H * W, C)
    # weight (C, E, pd, ph, pw) -> (pd, ph, C, pw*E); bias tiled over pw.
    w_r = (jnp.transpose(weight, (2, 3, 0, 4, 1))
           .reshape(pd, ph, C, pwE).astype(x.dtype))
    b_r = jnp.tile(bias, pw).reshape(1, pwE).astype(jnp.float32)

    if fold_w:
        out_shape = jax.ShapeDtypeStruct((B * D * pd, H, ph * W * pwE), x.dtype)
        out_spec = pl.BlockSpec(
            (None, th, ph * W * pwE),
            lambda b, d, kd, t: (b * (D * pd) + d * pd + kd, t, 0))
        scratch_shapes = [pltpu.VMEM((th, W, pwE), x.dtype)]
    else:
        out_shape = jax.ShapeDtypeStruct((B * D * pd, H, ph, W, pwE), x.dtype)
        out_spec = pl.BlockSpec(
            (None, th, ph, W, pwE),
            lambda b, d, kd, t: (b * (D * pd) + d * pd + kd, t, 0, 0, 0))
        scratch_shapes = []

    out = pl.pallas_call(
        functools.partial(_patch_embed_kernel, ph=ph, th=th, W=W, pwE=pwE,
                          fold_w=fold_w),
        out_shape=out_shape,
        grid_spec=pltpu.PrefetchScalarGridSpec(
            num_scalar_prefetch=0,
            # pd hoisted onto the grid (streams the weight, one contiguous
            # output slab per step); t innermost -> sequential HBM writes.
            grid=(B, D, pd, nT),
            in_specs=[
                pl.BlockSpec((None, th * W, C),
                             lambda b, d, kd, t: (b, d * nT + t, 0)),
                pl.BlockSpec((None, ph, C, pwE),
                             lambda b, d, kd, t: (kd, 0, 0, 0)),
                pl.BlockSpec((1, pwE), lambda b, d, kd, t: (0, 0)),
            ],
            out_specs=out_spec,
            scratch_shapes=scratch_shapes,
        ),
        compiler_params=pltpu.CompilerParams(
            dimension_semantics=("parallel", "parallel", "parallel", "parallel"),
            vmem_limit_bytes=int(vmem_limit),
        ),
    )(x3, w_r, b_r)

    # Free reshape to (B, N, E) -- the kernel already wrote tokens in order.
    return out.reshape(B, D * pd * H * ph * W * pw, E)


class PatchEmbed3D:
    """JAX/Pallas port of the PyTorch PatchEmbed3D module."""

    def __init__(self, img_size=(16, 96, 96), patch_size=(16, 16, 16),
                 in_chans=1, embed_dim=768, key=None):
        self.img_size = list(img_size)
        self.patch_size = list(patch_size)
        self.in_chans = in_chans
        self.embed_dim = embed_dim
        # Replicates the (odd) num_patches formula of the reference module.
        self.num_patches = (img_size[0] * patch_size[0]
                            * (img_size[1] * patch_size[1])
                            * (img_size[2] * patch_size[2]))

        if key is None:
            key = jax.random.PRNGKey(0)
        kw, kb = jax.random.split(key)
        pd, ph, pw = patch_size
        # ConvTranspose3d weight layout: (in_chans, embed_dim, kd, kh, kw)
        fan = in_chans * pd * ph * pw
        bound = 1.0 / (fan ** 0.5)
        self.weight = jax.random.uniform(
            kw, (in_chans, embed_dim, pd, ph, pw), jnp.float32, -bound, bound)
        self.bias = jax.random.uniform(
            kb, (embed_dim,), jnp.float32, -bound, bound)

    def __call__(self, x):
        B, C, D, H, W = x.shape
        pd, ph, pw = self.patch_size
        tokens = _patch_embed_pallas(x, self.weight, self.bias,
                                     (pd, ph, pw), self.embed_dim)
        # Replicates the original code: third output dim uses patch_size[1].
        return tokens, (D * pd, H * ph, W * ph)


def _reference(x, weight, bias, patch_size):
    """Pure-JAX reference of ConvTranspose3d(k=stride) + flatten/transpose."""
    B, C, D, H, W = x.shape
    pd, ph, pw = patch_size
    E = weight.shape[1]
    y = jnp.einsum("bcdhw,ceijk->bdhwijke", x, weight) + bias
    y = jnp.transpose(y, (0, 1, 4, 2, 5, 3, 6, 7))
    return y.reshape(B, D * pd * H * ph * W * pw, E)


if __name__ == "__main__":
    key = jax.random.PRNGKey(0)
    k_param, k_x, k_param2, k_x2 = jax.random.split(key, 4)

    # Config 1: pw*E = 64 (not a multiple of 128) -> lane-folded output path.
    B, C, D, H, W = 2, 4, 4, 8, 16
    patch = (2, 2, 2)
    embed_dim = 32
    mod = PatchEmbed3D(img_size=(D, H, W), patch_size=patch,
                       in_chans=C, embed_dim=embed_dim, key=k_param)
    x = jax.random.normal(k_x, (B, C, D, H, W), jnp.float32)
    tokens, out_size = mod(x)
    tokens = jax.block_until_ready(tokens)
    N = D * patch[0] * H * patch[1] * W * patch[2]
    assert tokens.shape == (B, N, embed_dim), tokens.shape
    assert out_size == (D * patch[0], H * patch[1], W * patch[1])
    ref = _reference(x, mod.weight, mod.bias, patch)
    assert jnp.allclose(tokens, ref, atol=1e-5, rtol=1e-5), \
        float(jnp.max(jnp.abs(tokens - ref)))

    # Config 2: pw*E = 128 (multiple of 128) -> direct lane-dense (W, pw*E) path.
    B2, C2, D2, H2, W2 = 1, 2, 2, 8, 16
    patch2 = (2, 2, 2)
    embed_dim2 = 64
    mod2 = PatchEmbed3D(img_size=(D2, H2, W2), patch_size=patch2,
                        in_chans=C2, embed_dim=embed_dim2, key=k_param2)
    x2 = jax.random.normal(k_x2, (B2, C2, D2, H2, W2), jnp.float32)
    tokens2, _ = mod2(x2)
    tokens2 = jax.block_until_ready(tokens2)
    ref2 = _reference(x2, mod2.weight, mod2.bias, patch2)
    assert jnp.allclose(tokens2, ref2, atol=1e-5, rtol=1e-5), \
        float(jnp.max(jnp.abs(tokens2 - ref2)))

    print("KERNEL_OK")
</pallas_src>

<mosaic_0001>
module attributes {stable_mosaic.version = 11 : i64} {
  func.func @_patch_embed_kernel(%arg0: i32, %arg1: i32, %arg2: i32, %arg3: i32, %arg4: memref<1x128x4xf32, #tpu.memory_space<vmem>>, %arg5: memref<1x2x4x64xf32, #tpu.memory_space<vmem>>, %arg6: memref<1x64xf32, #tpu.memory_space<vmem>>, %arg7: memref<1x8x2048xf32, #tpu.memory_space<vmem>>, %arg8: memref<8x16x64xf32, #tpu.memory_space<vmem>>) attributes {dimension_semantics = [#tpu.dimension_semantics<parallel>, #tpu.dimension_semantics<parallel>, #tpu.dimension_semantics<parallel>, #tpu.dimension_semantics<parallel>], iteration_bounds = array<i64: 2, 4, 2, 1>, scalar_prefetch = 0 : i64, scratch_operands = 1 : i64, tpu.core_type = #tpu.core_type<tc>, window_params = [{transform_indices = @transform_0, window_bounds = array<i64: 1, 128, 4>}, {transform_indices = @transform_1, window_bounds = array<i64: 1, 2, 4, 64>}, {pipeline_mode = #tpu.pipeline_mode<synchronous>, transform_indices = @transform_2, window_bounds = array<i64: 1, 64>}, {transform_indices = @transform_3, window_bounds = array<i64: 1, 8, 2048>}]} {
    %c0 = arith.constant 0 : index
    %c0_0 = arith.constant 0 : index
    %c0_1 = arith.constant 0 : index
    %0 = vector.load %arg4[%c0, %c0_0, %c0_1] : memref<1x128x4xf32, #tpu.memory_space<vmem>>, vector<1x128x4xf32>
    %1 = vector.shape_cast %0 : vector<1x128x4xf32> to vector<128x4xf32>
    %c0_2 = arith.constant 0 : index
    %c0_3 = arith.constant 0 : index
    %2 = vector.load %arg6[%c0_2, %c0_3] : memref<1x64xf32, #tpu.memory_space<vmem>>, vector<1x64xf32>
    %c0_4 = arith.constant 0 : index
    %c0_5 = arith.constant 0 : index
    %c0_6 = arith.constant 0 : index
    %c0_7 = arith.constant 0 : index
    %3 = vector.load %arg5[%c0_4, %c0_5, %c0_6, %c0_7] : memref<1x2x4x64xf32, #tpu.memory_space<vmem>>, vector<1x1x4x64xf32>
    %4 = vector.shape_cast %3 : vector<1x1x4x64xf32> to vector<4x64xf32>
    %cst = arith.constant dense<0.000000e+00> : vector<128x64xf32>
    %5 = tpu.matmul %1, %4, %cst {dimension_numbers = #tpu.dot_dimension_numbers<[1], [0], [0], [1], [0, 0, 1, 1], [], []>} : vector<128x4xf32>, vector<4x64xf32>, vector<128x64xf32> -> vector<128x64xf32>
    %6 = vector.broadcast %2 : vector<1x64xf32> to vector<128x64xf32>
    %7 = arith.addf %5, %6 : vector<128x64xf32>
    %8 = vector.shape_cast %7 : vector<128x64xf32> to vector<8x16x64xf32>
    %c0_8 = arith.constant 0 : index
    %c0_9 = arith.constant 0 : index
    %c0_10 = arith.constant 0 : index
    %9 = vector.load %arg8[%c0_8, %c0_9, %c0_10] : memref<8x16x64xf32, #tpu.memory_space<vmem>>, vector<8x16x64xf32>
    tpu.vector_store %arg8[%c0_8, %c0_9, %c0_10], %8 {strides = array<i32>} : memref<8x16x64xf32, #tpu.memory_space<vmem>>, vector<8x16x64xf32>,
    %c0_11 = arith.constant 0 : index
    %c0_12 = arith.constant 0 : index
    %c0_13 = arith.constant 0 : index
    %10 = vector.load %arg8[%c0_11, %c0_12, %c0_13] : memref<8x16x64xf32, #tpu.memory_space<vmem>>, vector<8x1x64xf32>
    %11 = vector.shape_cast %10 : vector<8x1x64xf32> to vector<8x64xf32>
    %c0_14 = arith.constant 0 : index
    %c0_15 = arith.constant 0 : index
    %c0_16 = arith.constant 0 : index
    %12 = vector.load %arg7[%c0_14, %c0_15, %c0_16] : memref<1x8x2048xf32, #tpu.memory_space<vmem>>, vector<1x8x64xf32>
    %13 = vector.shape_cast %12 : vector<1x8x64xf32> to vector<8x64xf32>
    %14 = vector.shape_cast %11 : vector<8x64xf32> to vector<1x8x64xf32>
    tpu.vector_store %arg7[%c0_14, %c0_15, %c0_16], %14 {strides = array<i32>} : memref<1x8x2048xf32, #tpu.memory_space<vmem>>, vector<1x8x64xf32>,
    %c0_17 = arith.constant 0 : index
    %c1 = arith.constant 1 : index
    %c0_18 = arith.constant 0 : index
    %15 = vector.load %arg8[%c0_17, %c1, %c0_18] : memref<8x16x64xf32, #tpu.memory_space<vmem>>, vector<8x1x64xf32>
    %16 = vector.shape_cast %15 : vector<8x1x64xf32> to vector<8x64xf32>
    %c0_19 = arith.constant 0 : index
    %c0_20 = arith.constant 0 : index
    %c64 = arith.constant 64 : index
    %17 = vector.load %arg7[%c0_19, %c0_20, %c64] : memref<1x8x2048xf32, #tpu.memory_space<vmem>>, vector<1x8x64xf32>
    %18 = vector.shape_cast %17 : vector<1x8x64xf32> to vector<8x64xf32>
    %19 = vector.shape_cast %16 : vector<8x64xf32> to vector<1x8x64xf32>
    tpu.vector_store %arg7[%c0_19, %c0_20, %c64], %19 {strides = array<i32>} : memref<1x8x2048xf32, #tpu.memory_space<vmem>>, vector<1x8x64xf32>,
    %c0_21 = arith.constant 0 : index
    %c2 = arith.constant 2 : index
    %c0_22 = arith.constant 0 : index
    %20 = vector.load %arg8[%c0_21, %c2, %c0_22] : memref<8x16x64xf32, #tpu.memory_space<vmem>>, vector<8x1x64xf32>
    %21 = vector.shape_cast %20 : vector<8x1x64xf32> to vector<8x64xf32>
    %c0_23 = arith.constant 0 : index
    %c0_24 = arith.constant 0 : index
    %c128 = arith.constant 128 : index
    %22 = vector.load %arg7[%c0_23, %c0_24, %c128] : memref<1x8x2048xf32, #tpu.memory_space<vmem>>, vector<1x8x64xf32>
    %23 = vector.shape_cast %22 : vector<1x8x64xf32> to vector<8x64xf32>
    %24 = vector.shape_cast %21 : vector<8x64xf32> to vector<1x8x64xf32>
    tpu.vector_store %arg7[%c0_23, %c0_24, %c128], %24 {strides = array<i32>} : memref<1x8x2048xf32, #tpu.memory_space<vmem>>, vector<1x8x64xf32>,
    %c0_25 = arith.constant 0 : index
    %c3 = arith.constant 3 : index
    %c0_26 = arith.constant 0 : index
    %25 = vector.load %arg8[%c0_25, %c3, %c0_26] : memref<8x16x64xf32, #tpu.memory_space<vmem>>, vector<8x1x64xf32>
    %26 = vector.shape_cast %25 : vector<8x1x64xf32> to vector<8x64xf32>
    %c0_27 = arith.constant 0 : index
    %c0_28 = arith.constant 0 : index
    %c192 = arith.constant 192 : index
    %27 = vector.load %arg7[%c0_27, %c0_28, %c192] : memref<1x8x2048xf32, #tpu.memory_space<vmem>>, vector<1x8x64xf32>
    %28 = vector.shape_cast %27 : vector<1x8x64xf32> to vector<8x64xf32>
    %29 = vector.shape_cast %26 : vector<8x64xf32> to vector<1x8x64xf32>
    tpu.vector_store %arg7[%c0_27, %c0_28, %c192], %29 {strides = array<i32>} : memref<1x8x2048xf32, #tpu.memory_space<vmem>>, vector<1x8x64xf32>,
    %c0_29 = arith.constant 0 : index
    %c4 = arith.constant 4 : index
    %c0_30 = arith.constant 0 : index
    %30 = vector.load %arg8[%c0_29, %c4, %c0_30] : memref<8x16x64xf32, #tpu.memory_space<vmem>>, vector<8x1x64xf32>
    %31 = vector.shape_cast %30 : vector<8x1x64xf32> to vector<8x64xf32>
    %c0_31 = arith.constant 0 : index
    %c0_32 = arith.constant 0 : index
    %c256 = arith.constant 256 : index
    %32 = vector.load %arg7[%c0_31, %c0_32, %c256] : memref<1x8x2048xf32, #tpu.memory_space<vmem>>, vector<1x8x64xf32>
    %33 = vector.shape_cast %32 : vector<1x8x64xf32> to vector<8x64xf32>
    %34 = vector.shape_cast %31 : vector<8x64xf32> to vector<1x8x64xf32>
    tpu.vector_store %arg7[%c0_31, %c0_32, %c256], %34 {strides = array<i32>} : memref<1x8x2048xf32, #tpu.memory_space<vmem>>, vector<1x8x64xf32>,
    %c0_33 = arith.constant 0 : index
    %c5 = arith.constant 5 : index
    %c0_34 = arith.constant 0 : index
    %35 = vector.load %arg8[%c0_33, %c5, %c0_34] : memref<8x16x64xf32, #tpu.memory_space<vmem>>, vector<8x1x64xf32>
    %36 = vector.shape_cast %35 : vector<8x1x64xf32> to vector<8x64xf32>
    %c0_35 = arith.constant 0 : index
    %c0_36 = arith.constant 0 : index
    %c320 = arith.constant 320 : index
    %37 = vector.load %arg7[%c0_35, %c0_36, %c320] : memref<1x8x2048xf32, #tpu.memory_space<vmem>>, vector<1x8x64xf32>
    %38 = vector.shape_cast %37 : vector<1x8x64xf32> to vector<8x64xf32>
    %39 = vector.shape_cast %36 : vector<8x64xf32> to vector<1x8x64xf32>
    tpu.vector_store %arg7[%c0_35, %c0_36, %c320], %39 {strides = array<i32>} : memref<1x8x2048xf32, #tpu.memory_space<vmem>>, vector<1x8x64xf32>,
    %c0_37 = arith.constant 0 : index
    %c6 = arith.constant 6 : index
    %c0_38 = arith.constant 0 : index
    %40 = vector.load %arg8[%c0_37, %c6, %c0_38] : memref<8x16x64xf32, #tpu.memory_space<vmem>>, vector<8x1x64xf32>
    %41 = vector.shape_cast %40 : vector<8x1x64xf32> to vector<8x64xf32>
    %c0_39 = arith.constant 0 : index
    %c0_40 = arith.constant 0 : index
    %c384 = arith.constant 384 : index
    %42 = vector.load %arg7[%c0_39, %c0_40, %c384] : memref<1x8x2048xf32, #tpu.memory_space<vmem>>, vector<1x8x64xf32>
    %43 = vector.shape_cast %42 : vector<1x8x64xf32> to vector<8x64xf32>
    %44 = vector.shape_cast %41 : vector<8x64xf32> to vector<1x8x64xf32>
    tpu.vector_store %arg7[%c0_39, %c0_40, %c384], %44 {strides = array<i32>} : memref<1x8x2048xf32, #tpu.memory_space<vmem>>, vector<1x8x64xf32>,
    %c0_41 = arith.constant 0 : index
    %c7 = arith.constant 7 : index
    %c0_42 = arith.constant 0 : index
    %45 = vector.load %arg8[%c0_41, %c7, %c0_42] : memref<8x16x64xf32, #tpu.memory_space<vmem>>, vector<8x1x64xf32>
    %46 = vector.shape_cast %45 : vector<8x1x64xf32> to vector<8x64xf32>
    %c0_43 = arith.constant 0 : index
    %c0_44 = arith.constant 0 : index
    %c448 = arith.constant 448 : index
    %47 = vector.load %arg7[%c0_43, %c0_44, %c448] : memref<1x8x2048xf32, #tpu.memory_space<vmem>>, vector<1x8x64xf32>
    %48 = vector.shape_cast %47 : vector<1x8x64xf32> to vector<8x64xf32>
    %49 = vector.shape_cast %46 : vector<8x64xf32> to vector<1x8x64xf32>
    tpu.vector_store %arg7[%c0_43, %c0_44, %c448], %49 {strides = array<i32>} : memref<1x8x2048xf32, #tpu.memory_space<vmem>>, vector<1x8x64xf32>,
    %c0_45 = arith.constant 0 : index
    %c8 = arith.constant 8 : index
    %c0_46 = arith.constant 0 : index
    %50 = vector.load %arg8[%c0_45, %c8, %c0_46] : memref<8x16x64xf32, #tpu.memory_space<vmem>>, vector<8x1x64xf32>
    %51 = vector.shape_cast %50 : vector<8x1x64xf32> to vector<8x64xf32>
    %c0_47 = arith.constant 0 : index
    %c0_48 = arith.constant 0 : index
    %c512 = arith.constant 512 : index
    %52 = vector.load %arg7[%c0_47, %c0_48, %c512] : memref<1x8x2048xf32, #tpu.memory_space<vmem>>, vector<1x8x64xf32>
    %53 = vector.shape_cast %52 : vector<1x8x64xf32> to vector<8x64xf32>
    %54 = vector.shape_cast %51 : vector<8x64xf32> to vector<1x8x64xf32>
    tpu.vector_store %arg7[%c0_47, %c0_48, %c512], %54 {strides = array<i32>} : memref<1x8x2048xf32, #tpu.memory_space<vmem>>, vector<1x8x64xf32>,
    %c0_49 = arith.constant 0 : index
    %c9 = arith.constant 9 : index
    %c0_50 = arith.constant 0 : index
    %55 = vector.load %arg8[%c0_49, %c9, %c0_50] : memref<8x16x64xf32, #tpu.memory_space<vmem>>, vector<8x1x64xf32>
    %56 = vector.shape_cast %55 : vector<8x1x64xf32> to vector<8x64xf32>
    %c0_51 = arith.constant 0 : index
    %c0_52 = arith.constant 0 : index
    %c576 = arith.constant 576 : index
    %57 = vector.load %arg7[%c0_51, %c0_52, %c576] : memref<1x8x2048xf32, #tpu.memory_space<vmem>>, vector<1x8x64xf32>
    %58 = vector.shape_cast %57 : vector<1x8x64xf32> to vector<8x64xf32>
    %59 = vector.shape_cast %56 : vector<8x64xf32> to vector<1x8x64xf32>
    tpu.vector_store %arg7[%c0_51, %c0_52, %c576], %59 {strides = array<i32>} : memref<1x8x2048xf32, #tpu.memory_space<vmem>>, vector<1x8x64xf32>,
    %c0_53 = arith.constant 0 : index
    %c10 = arith.constant 10 : index
    %c0_54 = arith.constant 0 : index
    %60 = vector.load %arg8[%c0_53, %c10, %c0_54] : memref<8x16x64xf32, #tpu.memory_space<vmem>>, vector<8x1x64xf32>
    %61 = vector.shape_cast %60 : vector<8x1x64xf32> to vector<8x64xf32>
    %c0_55 = arith.constant 0 : index
    %c0_56 = arith.constant 0 : index
    %c640 = arith.constant 640 : index
    %62 = vector.load %arg7[%c0_55, %c0_56, %c640] : memref<1x8x2048xf32, #tpu.memory_space<vmem>>, vector<1x8x64xf32>
    %63 = vector.shape_cast %62 : vector<1x8x64xf32> to vector<8x64xf32>
    %64 = vector.shape_cast %61 : vector<8x64xf32> to vector<1x8x64xf32>
    tpu.vector_store %arg7[%c0_55, %c0_56, %c640], %64 {strides = array<i32>} : memref<1x8x2048xf32, #tpu.memory_space<vmem>>, vector<1x8x64xf32>,
    %c0_57 = arith.constant 0 : index
    %c11 = arith.constant 11 : index
    %c0_58 = arith.constant 0 : index
    %65 = vector.load %arg8[%c0_57, %c11, %c0_58] : memref<8x16x64xf32, #tpu.memory_space<vmem>>, vector<8x1x64xf32>
    %66 = vector.shape_cast %65 : vector<8x1x64xf32> to vector<8x64xf32>
    %c0_59 = arith.constant 0 : index
    %c0_60 = arith.constant 0 : index
    %c704 = arith.constant 704 : index
    %67 = vector.load %arg7[%c0_59, %c0_60, %c704] : memref<1x8x2048xf32, #tpu.memory_space<vmem>>, vector<1x8x64xf32>
    %68 = vector.shape_cast %67 : vector<1x8x64xf32> to vector<8x64xf32>
    %69 = vector.shape_cast %66 : vector<8x64xf32> to vector<1x8x64xf32>
    tpu.vector_store %arg7[%c0_59, %c0_60, %c704], %69 {strides = array<i32>} : memref<1x8x2048xf32, #tpu.memory_space<vmem>>, vector<1x8x64xf32>,
    %c0_61 = arith.constant 0 : index
    %c12 = arith.constant 12 : index
    %c0_62 = arith.constant 0 : index
    %70 = vector.load %arg8[%c0_61, %c12, %c0_62] : memref<8x16x64xf32, #tpu.memory_space<vmem>>, vector<8x1x64xf32>
    %71 = vector.shape_cast %70 : vector<8x1x64xf32> to vector<8x64xf32>
    %c0_63 = arith.constant 0 : index
    %c0_64 = arith.constant 0 : index
    %c768 = arith.constant 768 : index
    %72 = vector.load %arg7[%c0_63, %c0_64, %c768] : memref<1x8x2048xf32, #tpu.memory_space<vmem>>, vector<1x8x64xf32>
    %73 = vector.shape_cast %72 : vector<1x8x64xf32> to vector<8x64xf32>
    %74 = vector.shape_cast %71 : vector<8x64xf32> to vector<1x8x64xf32>
    tpu.vector_store %arg7[%c0_63, %c0_64, %c768], %74 {strides = array<i32>} : memref<1x8x2048xf32, #tpu.memory_space<vmem>>, vector<1x8x64xf32>,
    %c0_65 = arith.constant 0 : index
    %c13 = arith.constant 13 : index
    %c0_66 = arith.constant 0 : index
    %75 = vector.load %arg8[%c0_65, %c13, %c0_66] : memref<8x16x64xf32, #tpu.memory_space<vmem>>, vector<8x1x64xf32>
    %76 = vector.shape_cast %75 : vector<8x1x64xf32> to vector<8x64xf32>
    %c0_67 = arith.constant 0 : index
    %c0_68 = arith.constant 0 : index
    %c832 = arith.constant 832 : index
    %77 = vector.load %arg7[%c0_67, %c0_68, %c832] : memref<1x8x2048xf32, #tpu.memory_space<vmem>>, vector<1x8x64xf32>
    %78 = vector.shape_cast %77 : vector<1x8x64xf32> to vector<8x64xf32>
    %79 = vector.shape_cast %76 : vector<8x64xf32> to vector<1x8x64xf32>
    tpu.vector_store %arg7[%c0_67, %c0_68, %c832], %79 {strides = array<i32>} : memref<1x8x2048xf32, #tpu.memory_space<vmem>>, vector<1x8x64xf32>,
    %c0_69 = arith.constant 0 : index
    %c14 = arith.constant 14 : index
    %c0_70 = arith.constant 0 : index
    %80 = vector.load %arg8[%c0_69, %c14, %c0_70] : memref<8x16x64xf32, #tpu.memory_space<vmem>>, vector<8x1x64xf32>
    %81 = vector.shape_cast %80 : vector<8x1x64xf32> to vector<8x64xf32>
    %c0_71 = arith.constant 0 : index
    %c0_72 = arith.constant 0 : index
    %c896 = arith.constant 896 : index
    %82 = vector.load %arg7[%c0_71, %c0_72, %c896] : memref<1x8x2048xf32, #tpu.memory_space<vmem>>, vector<1x8x64xf32>
    %83 = vector.shape_cast %82 : vector<1x8x64xf32> to vector<8x64xf32>
    %84 = vector.shape_cast %81 : vector<8x64xf32> to vector<1x8x64xf32>
    tpu.vector_store %arg7[%c0_71, %c0_72, %c896], %84 {strides = array<i32>} : memref<1x8x2048xf32, #tpu.memory_space<vmem>>, vector<1x8x64xf32>,
    %c0_73 = arith.constant 0 : index
    %c15 = arith.constant 15 : index
    %c0_74 = arith.constant 0 : index
    %85 = vector.load %arg8[%c0_73, %c15, %c0_74] : memref<8x16x64xf32, #tpu.memory_space<vmem>>, vector<8x1x64xf32>
    %86 = vector.shape_cast %85 : vector<8x1x64xf32> to vector<8x64xf32>
    %c0_75 = arith.constant 0 : index
    %c0_76 = arith.constant 0 : index
    %c960 = arith.constant 960 : index
    %87 = vector.load %arg7[%c0_75, %c0_76, %c960] : memref<1x8x2048xf32, #tpu.memory_space<vmem>>, vector<1x8x64xf32>
    %88 = vector.shape_cast %87 : vector<1x8x64xf32> to vector<8x64xf32>
    %89 = vector.shape_cast %86 : vector<8x64xf32> to vector<1x8x64xf32>
    tpu.vector_store %arg7[%c0_75, %c0_76, %c960], %89 {strides = array<i32>} : memref<1x8x2048xf32, #tpu.memory_space<vmem>>, vector<1x8x64xf32>,
    %c0_77 = arith.constant 0 : index
    %c1_78 = arith.constant 1 : index
    %c0_79 = arith.constant 0 : index
    %c0_80 = arith.constant 0 : index
    %90 = vector.load %arg5[%c0_77, %c1_78, %c0_79, %c0_80] : memref<1x2x4x64xf32, #tpu.memory_space<vmem>>, vector<1x1x4x64xf32>
    %91 = vector.shape_cast %90 : vector<1x1x4x64xf32> to vector<4x64xf32>
    %cst_81 = arith.constant dense<0.000000e+00> : vector<128x64xf32>
    %92 = tpu.matmul %1, %91, %cst_81 {dimension_numbers = #tpu.dot_dimension_numbers<[1], [0], [0], [1], [0, 0, 1, 1], [], []>} : vector<128x4xf32>, vector<4x64xf32>, vector<128x64xf32> -> vector<128x64xf32>
    %93 = vector.broadcast %2 : vector<1x64xf32> to vector<128x64xf32>
    %94 = arith.addf %92, %93 : vector<128x64xf32>
    %95 = vector.shape_cast %94 : vector<128x64xf32> to vector<8x16x64xf32>
    %c0_82 = arith.constant 0 : index
    %c0_83 = arith.constant 0 : index
    %c0_84 = arith.constant 0 : index
    %96 = vector.load %arg8[%c0_82, %c0_83, %c0_84] : memref<8x16x64xf32, #tpu.memory_space<vmem>>, vector<8x16x64xf32>
    tpu.vector_store %arg8[%c0_82, %c0_83, %c0_84], %95 {strides = array<i32>} : memref<8x16x64xf32, #tpu.memory_space<vmem>>, vector<8x16x64xf32>,
    %c0_85 = arith.constant 0 : index
    %c0_86 = arith.constant 0 : index
    %c0_87 = arith.constant 0 : index
    %97 = vector.load %arg8[%c0_85, %c0_86, %c0_87] : memref<8x16x64xf32, #tpu.memory_space<vmem>>, vector<8x1x64xf32>
    %98 = vector.shape_cast %97 : vector<8x1x64xf32> to vector<8x64xf32>
    %c0_88 = arith.constant 0 : index
    %c0_89 = arith.constant 0 : index
    %c1024 = arith.constant 1024 : index
    %99 = vector.load %arg7[%c0_88, %c0_89, %c1024] : memref<1x8x2048xf32, #tpu.memory_space<vmem>>, vector<1x8x64xf32>
    %100 = vector.shape_cast %99 : vector<1x8x64xf32> to vector<8x64xf32>
    %101 = vector.shape_cast %98 : vector<8x64xf32> to vector<1x8x64xf32>
    tpu.vector_store %arg7[%c0_88, %c0_89, %c1024], %101 {strides = array<i32>} : memref<1x8x2048xf32, #tpu.memory_space<vmem>>, vector<1x8x64xf32>,
    %c0_90 = arith.constant 0 : index
    %c1_91 = arith.constant 1 : index
    %c0_92 = arith.constant 0 : index
    %102 = vector.load %arg8[%c0_90, %c1_91, %c0_92] : memref<8x16x64xf32, #tpu.memory_space<vmem>>, vector<8x1x64xf32>
    %103 = vector.shape_cast %102 : vector<8x1x64xf32> to vector<8x64xf32>
    %c0_93 = arith.constant 0 : index
    %c0_94 = arith.constant 0 : index
    %c1088 = arith.constant 1088 : index
    %104 = vector.load %arg7[%c0_93, %c0_94, %c1088] : memref<1x8x2048xf32, #tpu.memory_space<vmem>>, vector<1x8x64xf32>
    %105 = vector.shape_cast %104 : vector<1x8x64xf32> to vector<8x64xf32>
    %106 = vector.shape_cast %103 : vector<8x64xf32> to vector<1x8x64xf32>
    tpu.vector_store %arg7[%c0_93, %c0_94, %c1088], %106 {strides = array<i32>} : memref<1x8x2048xf32, #tpu.memory_space<vmem>>, vector<1x8x64xf32>,
    %c0_95 = arith.constant 0 : index
    %c2_96 = arith.constant 2 : index
    %c0_97 = arith.constant 0 : index
    %107 = vector.load %arg8[%c0_95, %c2_96, %c0_97] : memref<8x16x64xf32, #tpu.memory_space<vmem>>, vector<8x1x64xf32>
    %108 = vector.shape_cast %107 : vector<8x1x64xf32> to vector<8x64xf32>
    %c0_98 = arith.constant 0 : index
    %c0_99 = arith.constant 0 : index
    %c1152 = arith.constant 1152 : index
    %109 = vector.load %arg7[%c0_98, %c0_99, %c1152] : memref<1x8x2048xf32, #tpu.memory_space<vmem>>, vector<1x8x64xf32>
    %110 = vector.shape_cast %109 : vector<1x8x64xf32> to vector<8x64xf32>
    %111 = vector.shape_cast %108 : vector<8x64xf32> to vector<1x8x64xf32>
    tpu.vector_store %arg7[%c0_98, %c0_99, %c1152], %111 {strides = array<i32>} : memref<1x8x2048xf32, #tpu.memory_space<vmem>>, vector<1x8x64xf32>,
    %c0_100 = arith.constant 0 : index
    %c3_101 = arith.constant 3 : index
    %c0_102 = arith.constant 0 : index
    %112 = vector.load %arg8[%c0_100, %c3_101, %c0_102] : memref<8x16x64xf32, #tpu.memory_space<vmem>>, vector<8x1x64xf32>
    %113 = vector.shape_cast %112 : vector<8x1x64xf32> to vector<8x64xf32>
    %c0_103 = arith.constant 0 : index
    %c0_104 = arith.constant 0 : index
    %c1216 = arith.constant 1216 : index
    %114 = vector.load %arg7[%c0_103, %c0_104, %c1216] : memref<1x8x2048xf32, #tpu.memory_space<vmem>>, vector<1x8x64xf32>
    %115 = vector.shape_cast %114 : vector<1x8x64xf32> to vector<8x64xf32>
    %116 = vector.shape_cast %113 : vector<8x64xf32> to vector<1x8x64xf32>
    tpu.vector_store %arg7[%c0_103, %c0_104, %c1216], %116 {strides = array<i32>} : memref<1x8x2048xf32, #tpu.memory_space<vmem>>, vector<1x8x64xf32>,
    %c0_105 = arith.constant 0 : index
    %c4_106 = arith.constant 4 : index
    %c0_107 = arith.constant 0 : index
    %117 = vector.load %arg8[%c0_105, %c4_106, %c0_107] : memref<8x16x64xf32, #tpu.memory_space<vmem>>, vector<8x1x64xf32>
    %118 = vector.shape_cast %117 : vector<8x1x64xf32> to vector<8x64xf32>
    %c0_108 = arith.constant 0 : index
    %c0_109 = arith.constant 0 : index
    %c1280 = arith.constant 1280 : index
    %119 = vector.load %arg7[%c0_108, %c0_109, %c1280] : memref<1x8x2048xf32, #tpu.memory_space<vmem>>, vector<1x8x64xf32>
    %120 = vector.shape_cast %119 : vector<1x8x64xf32> to vector<8x64xf32>
    %121 = vector.shape_cast %118 : vector<8x64xf32> to vector<1x8x64xf32>
    tpu.vector_store %arg7[%c0_108, %c0_109, %c1280], %121 {strides = array<i32>} : memref<1x8x2048xf32, #tpu.memory_space<vmem>>, vector<1x8x64xf32>,
    %c0_110 = arith.constant 0 : index
    %c5_111 = arith.constant 5 : index
    %c0_112 = arith.constant 0 : index
    %122 = vector.load %arg8[%c0_110, %c5_111, %c0_112] : memref<8x16x64xf32, #tpu.memory_space<vmem>>, vector<8x1x64xf32>
    %123 = vector.shape_cast %122 : vector<8x1x64xf32> to vector<8x64xf32>
    %c0_113 = arith.constant 0 : index
    %c0_114 = arith.constant 0 : index
    %c1344 = arith.constant 1344 : index
    %124 = vector.load %arg7[%c0_113, %c0_114, %c1344] : memref<1x8x2048xf32, #tpu.memory_space<vmem>>, vector<1x8x64xf32>
    %125 = vector.shape_cast %124 : vector<1x8x64xf32> to vector<8x64xf32>
    %126 = vector.shape_cast %123 : vector<8x64xf32> to vector<1x8x64xf32>
    tpu.vector_store %arg7[%c0_113, %c0_114, %c1344], %126 {strides = array<i32>} : memref<1x8x2048xf32, #tpu.memory_space<vmem>>, vector<1x8x64xf32>,
    %c0_115 = arith.constant 0 : index
    %c6_116 = arith.constant 6 : index
    %c0_117 = arith.constant 0 : index
    %127 = vector.load %arg8[%c0_115, %c6_116, %c0_117] : memref<8x16x64xf32, #tpu.memory_space<vmem>>, vector<8x1x64xf32>
    %128 = vector.shape_cast %127 : vector<8x1x64xf32> to vector<8x64xf32>
    %c0_118 = arith.constant 0 : index
    %c0_119 = arith.constant 0 : index
    %c1408 = arith.constant 1408 : index
    %129 = vector.load %arg7[%c0_118, %c0_119, %c1408] : memref<1x8x2048xf32, #tpu.memory_space<vmem>>, vector<1x8x64xf32>
    %130 = vector.shape_cast %129 : vector<1x8x64xf32> to vector<8x64xf32>
    %131 = vector.shape_cast %128 : vector<8x64xf32> to vector<1x8x64xf32>
    tpu.vector_store %arg7[%c0_118, %c0_119, %c1408], %131 {strides = array<i32>} : memref<1x8x2048xf32, #tpu.memory_space<vmem>>, vector<1x8x64xf32>,
    %c0_120 = arith.constant 0 : index
    %c7_121 = arith.constant 7 : index
    %c0_122 = arith.constant 0 : index
    %132 = vector.load %arg8[%c0_120, %c7_121, %c0_122] : memref<8x16x64xf32, #tpu.memory_space<vmem>>, vector<8x1x64xf32>
    %133 = vector.shape_cast %132 : vector<8x1x64xf32> to vector<8x64xf32>
    %c0_123 = arith.constant 0 : index
    %c0_124 = arith.constant 0 : index
    %c1472 = arith.constant 1472 : index
    %134 = vector.load %arg7[%c0_123, %c0_124, %c1472] : memref<1x8x2048xf32, #tpu.memory_space<vmem>>, vector<1x8x64xf32>
    %135 = vector.shape_cast %134 : vector<1x8x64xf32> to vector<8x64xf32>
    %136 = vector.shape_cast %133 : vector<8x64xf32> to vector<1x8x64xf32>
    tpu.vector_store %arg7[%c0_123, %c0_124, %c1472], %136 {strides = array<i32>} : memref<1x8x2048xf32, #tpu.memory_space<vmem>>, vector<1x8x64xf32>,
    %c0_125 = arith.constant 0 : index
    %c8_126 = arith.constant 8 : index
    %c0_127 = arith.constant 0 : index
    %137 = vector.load %arg8[%c0_125, %c8_126, %c0_127] : memref<8x16x64xf32, #tpu.memory_space<vmem>>, vector<8x1x64xf32>
    %138 = vector.shape_cast %137 : vector<8x1x64xf32> to vector<8x64xf32>
    %c0_128 = arith.constant 0 : index
    %c0_129 = arith.constant 0 : index
    %c1536 = arith.constant 1536 : index
    %139 = vector.load %arg7[%c0_128, %c0_129, %c1536] : memref<1x8x2048xf32, #tpu.memory_space<vmem>>, vector<1x8x64xf32>
    %140 = vector.shape_cast %139 : vector<1x8x64xf32> to vector<8x64xf32>
    %141 = vector.shape_cast %138 : vector<8x64xf32> to vector<1x8x64xf32>
    tpu.vector_store %arg7[%c0_128, %c0_129, %c1536], %141 {strides = array<i32>} : memref<1x8x2048xf32, #tpu.memory_space<vmem>>, vector<1x8x64xf32>,
    %c0_130 = arith.constant 0 : index
    %c9_131 = arith.constant 9 : index
    %c0_132 = arith.constant 0 : index
    %142 = vector.load %arg8[%c0_130, %c9_131, %c0_132] : memref<8x16x64xf32, #tpu.memory_space<vmem>>, vector<8x1x64xf32>
    %143 = vector.shape_cast %142 : vector<8x1x64xf32> to vector<8x64xf32>
    %c0_133 = arith.constant 0 : index
    %c0_134 = arith.constant 0 : index
    %c1600 = arith.constant 1600 : index
    %144 = vector.load %arg7[%c0_133, %c0_134, %c1600] : memref<1x8x2048xf32, #tpu.memory_space<vmem>>, vector<1x8x64xf32>
    %145 = vector.shape_cast %144 : vector<1x8x64xf32> to vector<8x64xf32>
    %146 = vector.shape_cast %143 : vector<8x64xf32> to vector<1x8x64xf32>
    tpu.vector_store %arg7[%c0_133, %c0_134, %c1600], %146 {strides = array<i32>} : memref<1x8x2048xf32, #tpu.memory_space<vmem>>, vector<1x8x64xf32>,
    %c0_135 = arith.constant 0 : index
    %c10_136 = arith.constant 10 : index
    %c0_137 = arith.constant 0 : index
    %147 = vector.load %arg8[%c0_135, %c10_136, %c0_137] : memref<8x16x64xf32, #tpu.memory_space<vmem>>, vector<8x1x64xf32>
    %148 = vector.shape_cast %147 : vector<8x1x64xf32> to vector<8x64xf32>
    %c0_138 = arith.constant 0 : index
    %c0_139 = arith.constant 0 : index
    %c1664 = arith.constant 1664 : index
    %149 = vector.load %arg7[%c0_138, %c0_139, %c1664] : memref<1x8x2048xf32, #tpu.memory_space<vmem>>, vector<1x8x64xf32>
    %150 = vector.shape_cast %149 : vector<1x8x64xf32> to vector<8x64xf32>
    %151 = vector.shape_cast %148 : vector<8x64xf32> to vector<1x8x64xf32>
    tpu.vector_store %arg7[%c0_138, %c0_139, %c1664], %151 {strides = array<i32>} : memref<1x8x2048xf32, #tpu.memory_space<vmem>>, vector<1x8x64xf32>,
    %c0_140 = arith.constant 0 : index
    %c11_141 = arith.constant 11 : index
    %c0_142 = arith.constant 0 : index
    %152 = vector.load %arg8[%c0_140, %c11_141, %c0_142] : memref<8x16x64xf32, #tpu.memory_space<vmem>>, vector<8x1x64xf32>
    %153 = vector.shape_cast %152 : vector<8x1x64xf32> to vector<8x64xf32>
    %c0_143 = arith.constant 0 : index
    %c0_144 = arith.constant 0 : index
    %c1728 = arith.constant 1728 : index
    %154 = vector.load %arg7[%c0_143, %c0_144, %c1728] : memref<1x8x2048xf32, #tpu.memory_space<vmem>>, vector<1x8x64xf32>
    %155 = vector.shape_cast %154 : vector<1x8x64xf32> to vector<8x64xf32>
    %156 = vector.shape_cast %153 : vector<8x64xf32> to vector<1x8x64xf32>
    tpu.vector_store %arg7[%c0_143, %c0_144, %c1728], %156 {strides = array<i32>} : memref<1x8x2048xf32, #tpu.memory_space<vmem>>, vector<1x8x64xf32>,
    %c0_145 = arith.constant 0 : index
    %c12_146 = arith.constant 12 : index
    %c0_147 = arith.constant 0 : index
    %157 = vector.load %arg8[%c0_145, %c12_146, %c0_147] : memref<8x16x64xf32, #tpu.memory_space<vmem>>, vector<8x1x64xf32>
    %158 = vector.shape_cast %157 : vector<8x1x64xf32> to vector<8x64xf32>
    %c0_148 = arith.constant 0 : index
    %c0_149 = arith.constant 0 : index
    %c1792 = arith.constant 1792 : index
    %159 = vector.load %arg7[%c0_148, %c0_149, %c1792] : memref<1x8x2048xf32, #tpu.memory_space<vmem>>, vector<1x8x64xf32>
    %160 = vector.shape_cast %159 : vector<1x8x64xf32> to vector<8x64xf32>
    %161 = vector.shape_cast %158 : vector<8x64xf32> to vector<1x8x64xf32>
    tpu.vector_store %arg7[%c0_148, %c0_149, %c1792], %161 {strides = array<i32>} : memref<1x8x2048xf32, #tpu.memory_space<vmem>>, vector<1x8x64xf32>,
    %c0_150 = arith.constant 0 : index
    %c13_151 = arith.constant 13 : index
    %c0_152 = arith.constant 0 : index
    %162 = vector.load %arg8[%c0_150, %c13_151, %c0_152] : memref<8x16x64xf32, #tpu.memory_space<vmem>>, vector<8x1x64xf32>
    %163 = vector.shape_cast %162 : vector<8x1x64xf32> to vector<8x64xf32>
    %c0_153 = arith.constant 0 : index
    %c0_154 = arith.constant 0 : index
    %c1856 = arith.constant 1856 : index
    %164 = vector.load %arg7[%c0_153, %c0_154, %c1856] : memref<1x8x2048xf32, #tpu.memory_space<vmem>>, vector<1x8x64xf32>
    %165 = vector.shape_cast %164 : vector<1x8x64xf32> to vector<8x64xf32>
    %166 = vector.shape_cast %163 : vector<8x64xf32> to vector<1x8x64xf32>
    tpu.vector_store %arg7[%c0_153, %c0_154, %c1856], %166 {strides = array<i32>} : memref<1x8x2048xf32, #tpu.memory_space<vmem>>, vector<1x8x64xf32>,
    %c0_155 = arith.constant 0 : index
    %c14_156 = arith.constant 14 : index
    %c0_157 = arith.constant 0 : index
    %167 = vector.load %arg8[%c0_155, %c14_156, %c0_157] : memref<8x16x64xf32, #tpu.memory_space<vmem>>, vector<8x1x64xf32>
    %168 = vector.shape_cast %167 : vector<8x1x64xf32> to vector<8x64xf32>
    %c0_158 = arith.constant 0 : index
    %c0_159 = arith.constant 0 : index
    %c1920 = arith.constant 1920 : index
    %169 = vector.load %arg7[%c0_158, %c0_159, %c1920] : memref<1x8x2048xf32, #tpu.memory_space<vmem>>, vector<1x8x64xf32>
    %170 = vector.shape_cast %169 : vector<1x8x64xf32> to vector<8x64xf32>
    %171 = vector.shape_cast %168 : vector<8x64xf32> to vector<1x8x64xf32>
    tpu.vector_store %arg7[%c0_158, %c0_159, %c1920], %171 {strides = array<i32>} : memref<1x8x2048xf32, #tpu.memory_space<vmem>>, vector<1x8x64xf32>,
    %c0_160 = arith.constant 0 : index
    %c15_161 = arith.constant 15 : index
    %c0_162 = arith.constant 0 : index
    %172 = vector.load %arg8[%c0_160, %c15_161, %c0_162] : memref<8x16x64xf32, #tpu.memory_space<vmem>>, vector<8x1x64xf32>
    %173 = vector.shape_cast %172 : vector<8x1x64xf32> to vector<8x64xf32>
    %c0_163 = arith.constant 0 : index
    %c0_164 = arith.constant 0 : index
    %c1984 = arith.constant 1984 : index
    %174 = vector.load %arg7[%c0_163, %c0_164, %c1984] : memref<1x8x2048xf32, #tpu.memory_space<vmem>>, vector<1x8x64xf32>
    %175 = vector.shape_cast %174 : vector<1x8x64xf32> to vector<8x64xf32>
    %176 = vector.shape_cast %173 : vector<8x64xf32> to vector<1x8x64xf32>
    tpu.vector_store %arg7[%c0_163, %c0_164, %c1984], %176 {strides = array<i32>} : memref<1x8x2048xf32, #tpu.memory_space<vmem>>, vector<1x8x64xf32>,
    return
  }
  func.func @transform_0(%arg0: i32, %arg1: i32, %arg2: i32, %arg3: i32) -> (i32, i32, i32) {
    %c1_i32 = arith.constant 1 : i32
    %0 = arith.muli %arg1, %c1_i32 : i32
    %1 = arith.addi %0, %arg3 : i32
    %c0_i32 = arith.constant 0 : i32
    %c0_i32_0 = arith.constant 0 : i32
    return %arg0, %1, %c0_i32 : i32, i32, i32
  }
  func.func @transform_1(%arg0: i32, %arg1: i32, %arg2: i32, %arg3: i32) -> (i32, i32, i32, i32) {
    %c0_i32 = arith.constant 0 : i32
    %c0_i32_0 = arith.constant 0 : i32
    %c0_i32_1 = arith.constant 0 : i32
    %c0_i32_2 = arith.constant 0 : i32
    return %arg2, %c0_i32, %c0_i32_0, %c0_i32_1 : i32, i32, i32, i32
  }
  func.func @transform_2(%arg0: i32, %arg1: i32, %arg2: i32, %arg3: i32) -> (i32, i32) {
    %c0_i32 = arith.constant 0 : i32
    %c0_i32_0 = arith.constant 0 : i32
    %c0_i32_1 = arith.constant 0 : i32
    return %c0_i32, %c0_i32_0 : i32, i32
  }
  func.func @transform_3(%arg0: i32, %arg1: i32, %arg2: i32, %arg3: i32) -> (i32, i32, i32) {
    %c8_i32 = arith.constant 8 : i32
    %0 = arith.muli %arg0, %c8_i32 : i32
    %c2_i32 = arith.constant 2 : i32
    %1 = arith.muli %arg1, %c2_i32 : i32
    %2 = arith.addi %0, %1 : i32
    %3 = arith.addi %2, %arg2 : i32
    %c0_i32 = arith.constant 0 : i32
    %c0_i32_0 = arith.constant 0 : i32
    return %3, %arg3, %c0_i32 : i32, i32, i32
  }
}

</mosaic_0001>

<bundles_post_ra>
// kernel: tpu_custom_call.1
= control target key start
LH: loop header
LB: loop body
LE: loop exit
PB: predicated region body
PF: predicated region fallthrough
CT: control target
= control target key end

     0   :  { %8 = vsyncpa [#allocation4], 0  ;;  %s3130_s0 = inlined_call_operand.vmem [shape: f32[2,512,4], index: 0, kind: input, shape index: {}]   ;;  %s3131_s1 = inlined_call_operand.vmem [shape: f32[2,2,4,64], index: 1, kind: input, shape index: {}]   ;;  %s3132_s2 = inlined_call_operand.vmem [shape: f32[1,64], index: 2, kind: input, shape index: {}]   ;;  %s3133_s3 = inlined_call_operand.hbm [shape: f32[16,8,2048], index: 3, kind: output, shape index: {}]  }
   0x1   :  { %10 = vsyncpa [#allocation4 + $0x1], 0  ;;  %s2212_s12 = smov 0   ;;  %s2214_s13 = smov 0  }
   0x2   :  { %s2216_s14 = smov 0   ;;  %s2218_s15 = smov 0  }
   0x3   :  { %s2220_s16 = smov 0   ;;  %s2222_s17 = smov 0  }
   0x4   :  { %s2224_s18 = smov 0   ;;  %s2226_s19 = smov 0  }
   0x5   :  { %s2228_s20 = smov 0   ;;  %s2230_s21 = smov 0  }
   0x6 LB: > { %s1846_s22 = sadd.s32 4294967295, %s2188_s21   ;;  %s34_s23 = sadd.s32 1, %s2176_s18  ;;  %s2188_s21 = sphi %s2230_s21, %s16_s21   ;;  %s2184_s20 = sphi %s2228_s20, %s3216_s20   ;;  %s2180_s19 = sphi %s2226_s19, %s3215_s19   ;;  %s2176_s18 = sphi %s2224_s18, %s3214_s18   ;;  %s2172_s17 = sphi %s2222_s17, %s3213_s17   ;;  %s2168_s16 = sphi %s2220_s16, %s3212_s16   ;;  %s2164_s15 = sphi %s2218_s15, %s3211_s15   ;;  %s2160_s14 = sphi %s2216_s14, %s3210_s14   ;;  %s2156_s13 = sphi %s2214_s13, %s3209_s13   ;;  %s2152_s12 = sphi %s2212_s12, %s3208_s12  }
   0x7   : > { %p36_p0 = scmp.ge.s32.totalorder %s34_s23, 2  ;;  %s38_s24 = sadd.s32 1, %s2180_s19 }
   0x8   : > { %s1847_s25 = sadd.s32 4294967294, %s2188_s21   ;;  %s42_s26 = sadd.s32 1, %s2184_s20 }
   0x9   : > { %s1848_s27 = sshll.u32 %s2184_s20, 3  ;;  %s1849_s28 = sshll.u32 %s2180_s19, 1 }
   0xa   : > { %s3218_s24 = smov (!%p36_p0, %s38_s24), %s2180_s19  ;;  %s3220_s23 = smov (%p36_p0, %s34_s23), 0 }
   0xb   : > { %p40_p1 = scmp.ge.s32.totalorder %s3218_s24, 4  ;;  %s125_s29 = sadd.s32 %s1849_s28, %s1848_s27 }
   0xc   : > { %p146_p2 = scmp.ne.s32.totalorder %s2160_s14, %s2156_s13  ;;  %p147_p3 = scmp.eq.s32.totalorder %s1846_s22, 15 }
   0xd   : > { %s3222_s24 = smov (%p40_p1, %s3218_s24), 0  ;;  %s3224_s26 = smov (!%p40_p1, %s42_s26), %s2184_s20 }
   0xe   : > { %s1851_s30 = sshll.u32 %s3222_s24, 1  ;;  %p2278_p4 = por %p147_p3, %p146_p2 }
   0xf   : > { %p44_p5 = scmp.ge.s32.totalorder %s3224_s26, 2  ;;  %p152_p6 = scmp.ne.s32.totalorder %s2156_s13, %s2152_s12 }
  0x10   : > { %p153_p7 = scmp.eq.s32.totalorder %s1847_s25, 15  ;;  %p1854_p8 = scmp.ge.s32.totalorder %s2188_s21, 1 }
  0x11   : > { %s3226_s26 = smov (%p44_p5, %s3224_s26), 0  ;;  %p197_p10 = scmp.lt.s32.totalorder %s2188_s21, 17 }
  0x12   : > { %3136 = sst [smem:[#allocation6_spill]] %s3226_s26  ;;  %p2287_p9 = por %p153_p7, %p152_p6 }
  0x13   : > { %s126_s6 = sadd.s32 %s2176_s18, %s125_s29  ;;  %s1850_s7 = sshll.u32 %s3226_s26, 3 }
  0x14   : > { %s129_s8 = sadd.s32 %s1851_s30, %s1850_s7  ;;  %p198_p11 = pnand %p1854_p8, %p197_p10 }
  0x15   : > { %s130_s9 = sadd.s32 %s129_s8, %s3220_s23  ;;  %s136_s11 = sadd.s32 1, %s2160_s14 }
  0x16   : > { %s131_s10 = ssub.s32 %s126_s6, %s130_s9  ;;  %201 = sbr.rel (%p198_p11) target bundleno = 475 (0x1db), region = 32 }
  0x17   : > { %p134_p12 = scmp.eq.s32.totalorder %s131_s10, 0 }
  0x19   : > { %s2297_s22 = scalar_select %p134_p12, %s2160_s14, %s136_s11  }
  0x1b   : > { %p243_p13 = scmp.lt.s32.totalorder %s2164_s15, 1  ;;  %s1856_s25 = sshll.u32 %s2168_s16, 4  ;;  %vm325_vm0 = vcmask 1043456   ;;  %vm276_vm1 = vcmask 31744   ;;  %v2363_v18 = vld [vmem:[%s3132_s2] ss:$0 sm:$0xff] }
  0x1c   : > { %p233_p0 = scmp.lt.s32.totalorder %s2172_s17, 1  ;;  %p235_p1 = scmp.lt.s32.totalorder %s1856_s25, 63  ;;  %vm474_vm2 = vcmask 523264   ;;  %vm508_vm3 = vcmask 1041409   ;;  %vm511_vm4 = vcmask 1042434   ;;  %vm514_vm5 = vcmask 1043459  }
  0x1d   : > { %s244_s27 = scalar_select %p243_p13, %s2164_s15, 1  ;;  %vm517_vm6 = vcmask 1044484   ;;  %vm520_vm7 = vcmask 1045509   ;;  %vm523_vm8 = vcmask 1046534   ;;  %vm526_vm9 = vcmask 1047559  }
  0x1e   : > { %s234_s28 = scalar_select %p233_p0, %s2172_s17, 1  ;;  %vm563_vm10 = vcmask 1048064  }
  0x1f   : > { %s1904_s29 = sshll.u32 %s244_s27, 3  ;;  %s3228_s25 = smov (!%p235_p1, %s1856_s25), 63 }
  0x20   : > { %s247_s7 = scalar_lea.vmem %s3131_s1, %s1904_s29  ;;  %s1857_s8 = sshll.u32 %s234_s28, 6 }
  0x21   : > { %v269_v0 = vld [vmem:[%s247_s7] sm:$0xf]  ;;  %v1879_v1 = vld [vmem:[%s247_s7 + $0x4] sm:$0xf]  ;;  %s238_s9 = sadd.s32 %s1857_s8, %s3228_s25  ;;  %s2190_s28 = smov 64  }
  0x22   : > { %1940 = vmatprep.subr.msk.mxu0 %vm325_vm0, %v269_v0  ;;  %1966 = vmatprep.subr.msk.mxu1 %vm325_vm0, %v1879_v1  ;;  %s1858_s10 = sshll.u32 %s238_s9, 3  ;;  %s228_s29 = sand.u32 1, %s2156_s13  }
  0x23   : > { %1941 = vmatpush3.msk.msra.mxu0 %vm325_vm0, %v269_v0  ;;  %1967 = vmatpush3.msk.msra.mxu1 %vm325_vm0, %v1879_v1  ;;  %s2310_s27 = scalar_lea.vmem %s3130_s0, %s1858_s10  ;;  %s1855_s30 = sshll.u32 %s228_s29, 7 }
  0x24   : > { %v252_v2 = vld [vmem:[%s2310_s27] sm:$0xff]  ;;  %v253_v3 = vld [vmem:[%s2310_s27 + $0x8] sm:$0xff]  ;;  %v254_v4 = vld [vmem:[%s2310_s27 + $0x10] sm:$0xff]  ;;  %s2846_s6 = scalar_lea.vmem [#allocation3], %s1855_s30  ;;  %s1898_s7 = sshll.u32 %s2172_s17, 3 }
  0x25   : > { %1942 = vmatprep.mubr.msk.f32.mxu0 %vm276_vm1, %v252_v2  ;;  %1968 = vmatprep.mubr.msk.f32.mxu1 %vm276_vm1, %v252_v2  ;;  %v255_v5 = vld [vmem:[%s2310_s27 + $0x18] sm:$0xff]  ;;  %v256_v6 = vld [vmem:[%s2310_s27 + $0x20] sm:$0xff]  ;;  %v257_v7 = vld [vmem:[%s2310_s27 + $0x28] sm:$0xff]  ;;  %s1899_s8 = sshll.u32 %s2168_s16, 1  ;;  %s1722_s16 = scalar_lea.sflag [#allocation4], %s228_s29 }
  0x26   : > { %1943 = vmatmul.mubr.msk.f32.vlgmr.msra.gmra.mxu0 %vm276_vm1, %v253_v3  ;;  %1969 = vmatmul.mubr.msk.f32.vlgmr.msra.gmra.mxu1 %vm276_vm1, %v253_v3  ;;  %v258_v8 = vld [vmem:[%s2310_s27 + $0x30] sm:$0xff]  ;;  %v259_v9 = vld [vmem:[%s2310_s27 + $0x38] sm:$0xff]  ;;  %v260_v10 = vld [vmem:[%s2310_s27 + $0x40] sm:$0xff]  ;;  %s1731_s9 = sadd.s32 %s1899_s8, %s1898_s7 }
  0x27   : > { %1945 = vmatprep.mubr.msk.f32.mxu0 %vm276_vm1, %v254_v4  ;;  %1971 = vmatprep.mubr.msk.f32.mxu1 %vm276_vm1, %v254_v4  ;;  %v261_v11 = vld [vmem:[%s2310_s27 + $0x48] sm:$0xff]  ;;  %v262_v12 = vld [vmem:[%s2310_s27 + $0x50] sm:$0xff]  ;;  %v263_v13 = vld [vmem:[%s2310_s27 + $0x58] sm:$0xff]  ;;  %s1732_s10 = sadd.s32 %s2164_s15, %s1731_s9  ;;  %s2191_s15 = smov [#allocation3]  }
  0x28   : > { %v264_v14 = vld [vmem:[%s2310_s27 + $0x60] sm:$0xff]  ;;  %v265_v15 = vld [vmem:[%s2310_s27 + $0x68] sm:$0xff]  ;;  %v266_v16 = vld [vmem:[%s2310_s27 + $0x70] sm:$0xff]  ;;  %s1905_s11 = sshll.u32 %s1732_s10, 11  ;;  %s2084_s30 = sshll.u32 %s2191_s15, 4  ;;  %s2085_s30 = int_to_ptr.vmem [resolvable:$false] %s2084_s30 }
  0x29   : > { %v267_v17 = vld [vmem:[%s2310_s27 + $0x78] sm:$0xff]  ;;  %s1742_s27 = sshll.u32 %s2846_s6, 4  ;;  %s3074_s17 = scalar_lea.hbm %s3133_s3, %s1905_s11  ;;  %s1743_s27 = int_to_ptr.vmem [resolvable:$true] %s1742_s27 }
  0x2a   : > { %1946 = vmatmul.mubr.msk.f32.gmra.mxu0 %vm276_vm1, %v255_v5  ;;  %1972 = vmatmul.mubr.msk.f32.gmra.mxu1 %vm276_vm1, %v255_v5  ;;  %s2086_s7 = scalar_lea.vmem %s2085_s30, 4096  ;;  %p2087_p6 = scmp.lt.s32.totalorder %s1743_s27, %s2085_s30 }
  0x2b   : > { %1948 = vmatprep.mubr.msk.f32.mxu0 %vm276_vm1, %v256_v6  ;;  %1974 = vmatprep.mubr.msk.f32.mxu1 %vm276_vm1, %v256_v6 }
  0x2e   : > { %1949 = vmatmul.mubr.msk.f32.gmra.mxu0 %vm276_vm1, %v257_v7  ;;  %1975 = vmatmul.mubr.msk.f32.gmra.mxu1 %vm276_vm1, %v257_v7 }
  0x2f   : > { %1951 = vmatprep.mubr.msk.f32.mxu0 %vm276_vm1, %v258_v8  ;;  %1977 = vmatprep.mubr.msk.f32.mxu1 %vm276_vm1, %v258_v8 }
  0x32   : > { %1952 = vmatmul.mubr.msk.f32.gmra.mxu0 %vm276_vm1, %v259_v9  ;;  %1978 = vmatmul.mubr.msk.f32.gmra.mxu1 %vm276_vm1, %v259_v9 }
  0x33   : > { %1954 = vmatprep.mubr.msk.f32.mxu0 %vm276_vm1, %v260_v10  ;;  %1980 = vmatprep.mubr.msk.f32.mxu1 %vm276_vm1, %v260_v10 }
  0x36   : > { %1955 = vmatmul.mubr.msk.f32.gmra.mxu0 %vm276_vm1, %v261_v11  ;;  %1981 = vmatmul.mubr.msk.f32.gmra.mxu1 %vm276_vm1, %v261_v11 }
  0x37   : > { %1957 = vmatprep.mubr.msk.f32.mxu0 %vm276_vm1, %v262_v12  ;;  %1983 = vmatprep.mubr.msk.f32.mxu1 %vm276_vm1, %v262_v12 }
  0x3a   : > { %1958 = vmatmul.mubr.msk.f32.gmra.mxu0 %vm276_vm1, %v263_v13  ;;  %1984 = vmatmul.mubr.msk.f32.gmra.mxu1 %vm276_vm1, %v263_v13 }
  0x3b   : > { %1960 = vmatprep.mubr.msk.f32.mxu0 %vm276_vm1, %v264_v14  ;;  %1986 = vmatprep.mubr.msk.f32.mxu1 %vm276_vm1, %v264_v14 }
  0x3e   : > { %1961 = vmatmul.mubr.msk.f32.gmra.mxu0 %vm276_vm1, %v265_v15  ;;  %1987 = vmatmul.mubr.msk.f32.gmra.mxu1 %vm276_vm1, %v265_v15 }
  0x3f   : > { %1963 = vmatprep.mubr.msk.f32.mxu0 %vm276_vm1, %v266_v16  ;;  %1989 = vmatprep.mubr.msk.f32.mxu1 %vm276_vm1, %v266_v16 }
  0x42   : > { %1964 = vmatmul.mubr.msk.f32.gmra.mxu0 %vm276_vm1, %v267_v17  ;;  %1990 = vmatmul.mubr.msk.f32.gmra.mxu1 %vm276_vm1, %v267_v17 }
  0xe6   : > { %v1944_v19 = vpop.f32.mrf.mxu0  ;;  %v1970_v20 = vpop.f32.mrf.mxu1 }
  0xe7   : > { %v401_v21 = vadd.f32 %v1944_v19, %v2363_v18  ;;  %v1104_v34 = vadd.f32 %v1970_v20, %v2363_v18 }
  0xe8   : > { %v395_v22 = vpop.f32.mrf.mxu0  ;;  %v2366_v23 = vpop.f32.mrf.mxu1 }
  0xe9   : > { %476 = vst.msk [vmem:[#allocation2 + $0x8] sm:$0xff] %vm474_vm2, %v401_v21  ;;  %v396_v24 = vadd.f32 %v2363_v18, %v395_v22 }
  0xea   : > { %v1947_v25 = vpop.f32.mrf.mxu0  ;;  %v2370_v26 = vpop.f32.mrf.mxu1 }
  0xeb   : > { %475 = vst.msk [vmem:[#allocation2] sm:$0xff] %vm474_vm2, %v396_v24  ;;  %v411_v27 = vadd.f32 %v1947_v25, %v2363_v18 }
  0xec   : > { %v405_v28 = vpop.f32.mrf.mxu0  ;;  %v2374_v29 = vpop.f32.mrf.mxu1 }
  0xed   : > { %478 = vst.msk [vmem:[#allocation2 + $0x18] sm:$0xff] %vm474_vm2, %v411_v27  ;;  %v406_v30 = vadd.f32 %v2363_v18, %v405_v28  ;;  %v2443_v27 = vadd.f32 %v2363_v18, %v2366_v23 }
  0xee   : > { %v1950_v31 = vpop.f32.mrf.mxu0  ;;  %v2378_v32 = vpop.f32.mrf.mxu1 }
  0xef   : > { %477 = vst.msk [vmem:[#allocation2 + $0x10] sm:$0xff] %vm474_vm2, %v406_v30  ;;  %v421_v33 = vadd.f32 %v1950_v31, %v2363_v18  ;;  %v2447_v31 = vadd.f32 %v2370_v26, %v2363_v18 }
  0xf0   : > { %v415_v35 = vpop.f32.mrf.mxu0  ;;  %v2383_v36 = vpop.f32.mrf.mxu1  ;;  %v2385_v37 = vld [vmem:[#allocation2 + $0x8] sm:$0x1]  ;;  %v2387_v38 = vld [vmem:[#allocation2 + $0xa] sm:$0x1]  ;;  %v2391_v40 = vld [vmem:[#allocation2 + $0xc] sm:$0x1] }
  0xf1   : > { %480 = vst.msk [vmem:[#allocation2 + $0x28] sm:$0xff] %vm474_vm2, %v421_v33  ;;  %v416_v39 = vadd.f32 %v2363_v18, %v415_v35  ;;  %3138 = vst [vmem:[#allocation7_spill] sm:$0xff] %v2391_v40  ;;  %v2393_v41 = vld [vmem:[#allocation2 + $0xe] sm:$0x1]  ;;  %v2397_v44 = vld [vmem:[#allocation2 + $0xb] sm:$0x1]  ;;  %v2451_v33 = vadd.f32 %v2363_v18, %v2374_v29 }
  0xf2   : > { %v1953_v42 = vpop.f32.mrf.mxu0  ;;  %v2395_v43 = vpop.f32.mrf.mxu1  ;;  %v2401_v46 = vld [vmem:[#allocation2 + $0x9] sm:$0x1]  ;;  %v2403_v47 = vld [vmem:[#allocation2 + $0xf] sm:$0x1]  ;;  %v2405_v48 = vld [vmem:[#allocation2 + $0xd] sm:$0x1] }
  0xf3   : > { %479 = vst.msk [vmem:[#allocation2 + $0x20] sm:$0xff] %vm474_vm2, %v416_v39  ;;  %v431_v45 = vadd.f32 %v1953_v42, %v2363_v18  ;;  %1178 = vst.msk [vmem:[#allocation2 + $0x8] sm:$0xff] %vm474_vm2, %v1104_v34 }
  0xf4   : > { %v425_v49 = vpop.f32.mrf.mxu0  ;;  %v2407_v50 = vpop.f32.mrf.mxu1  ;;  %v862_v7 = vld [vmem:[#allocation2 + $0x1b] sm:$0x1]  ;;  %v796_v8 = vld [vmem:[#allocation2 + $0x19] sm:$0x1] }
  0xf5   : > { %482 = vst.msk [vmem:[#allocation2 + $0x38] sm:$0xff] %vm474_vm2, %v431_v45  ;;  %v426_v51 = vadd.f32 %v2363_v18, %v425_v49  ;;  %v877_v16 = vrot.slane %v862_v7, 7  ;;  %v811_v19 = vrot.slane %v796_v8, 7 }
  0xf6   : > { %v1956_v52 = vpop.f32.mrf.mxu0  ;;  %v2412_v53 = vpop.f32.mrf.mxu1 }
  0xf7   : > { %481 = vst.msk [vmem:[#allocation2 + $0x30] sm:$0xff] %vm474_vm2, %v426_v51  ;;  %v441_v54 = vadd.f32 %v1956_v52, %v2363_v18  ;;  %v878_v23 = vsel %vm508_vm3, %v877_v16, %v2397_v44  ;;  %v812_v49 = vsel %vm508_vm3, %v811_v19, %v2401_v46  ;;  %v2471_v44 = vadd.f32 %v2395_v43, %v2363_v18  ;;  %v2513_v16 = vld [vmem:[#allocation2 + $0x1c] sm:$0x1] }
  0xf8   : > { %v435_v55 = vpop.f32.mrf.mxu0  ;;  %v2416_v56 = vpop.f32.mrf.mxu1  ;;  %v863_v10 = vld [vmem:[#allocation2 + $0x2b] sm:$0x1]  ;;  %v797_v11 = vld [vmem:[#allocation2 + $0x29] sm:$0x1]  ;;  %v2499_v7 = vadd.f32 %v2412_v53, %v2363_v18  ;;  %3141 = vst [vmem:[#allocation10_spill] sm:$0xff] %v2513_v16 }
  0xf9   : > { %484 = vst.msk [vmem:[#allocation2 + $0x48] sm:$0xff] %vm474_vm2, %v441_v54  ;;  %v436_v57 = vadd.f32 %v2363_v18, %v435_v55  ;;  %v879_v22 = vrot.slane %v863_v10, 6  ;;  %v813_v25 = vrot.slane %v797_v11, 6  ;;  %v2515_v53 = vld [vmem:[#allocation2 + $0x1e] sm:$0x1] }
  0xfa   : > { %v1959_v58 = vpop.f32.mrf.mxu0  ;;  %v2422_v60 = vpop.f32.mrf.mxu1  ;;  %v928_v16 = vld [vmem:[#allocation2 + $0x1d] sm:$0x1] }
  0xfb   : > { %483 = vst.msk [vmem:[#allocation2 + $0x40] sm:$0xff] %vm474_vm2, %v436_v57  ;;  %v451_v59 = vadd.f32 %v1959_v58, %v2363_v18  ;;  %v880_v52 = vsel %vm511_vm4, %v879_v22, %v878_v23  ;;  %v814_v54 = vsel %vm511_vm4, %v813_v25, %v812_v49  ;;  %v2467_v57 = vadd.f32 %v2378_v32, %v2363_v18  ;;  %v2485_v32 = vld [vmem:[#allocation2 + $0x2c] sm:$0x1] }
  0xfc   : > { %v445_v61 = vpop.f32.mrf.mxu0  ;;  %v2428_v1 = vpop.f32.mrf.mxu1  ;;  %v864_v13 = vld [vmem:[#allocation2 + $0x3b] sm:$0x1]  ;;  %v798_v14 = vld [vmem:[#allocation2 + $0x39] sm:$0x1]  ;;  %3139 = vst [vmem:[#allocation8_spill] sm:$0xff] %v2485_v32  ;;  %v2503_v8 = vadd.f32 %v2422_v60, %v2363_v18 }
  0xfd   : > { %486 = vst.msk [vmem:[#allocation2 + $0x58] sm:$0xff] %vm474_vm2, %v451_v59  ;;  %v446_v62 = vadd.f32 %v2363_v18, %v445_v61  ;;  %v881_v28 = vrot.slane %v864_v13, 5  ;;  %v815_v30 = vrot.slane %v798_v14, 5  ;;  %v2475_v59 = vld [vmem:[#allocation2 + $0x1f] sm:$0x1] }
  0xfe   : > { %v1962_v63 = vpop.f32.mrf.mxu0  ;;  %v2434_v6 = vpop.f32.mrf.mxu1  ;;  %v2477_v61 = vld [vmem:[#allocation2 + $0x2f] sm:$0x1]  ;;  %v2489_v43 = vld [vmem:[#allocation2 + $0x38] sm:$0x1] }
  0xff   : > { %485 = vst.msk [vmem:[#allocation2 + $0x50] sm:$0xff] %vm474_vm2, %v446_v62  ;;  %v461_v0 = vadd.f32 %v1962_v63, %v2363_v18  ;;  %v882_v46 = vsel %vm514_vm5, %v881_v28, %v880_v52  ;;  %v816_v58 = vsel %vm514_vm5, %v815_v30, %v814_v54  ;;  %v2479_v62 = vld [vmem:[#allocation2 + $0x3f] sm:$0x1]  ;;  %v2481_v63 = vld [vmem:[#allocation2 + $0x28] sm:$0x1]  ;;  %v1164_v30 = vadd.f32 %v2434_v6, %v2363_v18 }
 0x100   : > { %v455_v2 = vpop.f32.mrf.mxu0  ;;  %v865_v15 = vld [vmem:[#allocation2 + $0x4b] sm:$0x1]  ;;  %v799_v17 = vld [vmem:[#allocation2 + $0x49] sm:$0x1]  ;;  %v2439_v20 = vpop.f32.mrf.mxu1  ;;  %v2507_v13 = vld [vmem:[#allocation2 + $0x4f] sm:$0x1] }
 0x101   : > { %488 = vst.msk [vmem:[#allocation2 + $0x68] sm:$0xff] %vm474_vm2, %v461_v0  ;;  %v456_v3 = vadd.f32 %v2363_v18, %v455_v2  ;;  %v883_v35 = vrot.slane %v865_v15, 4  ;;  %v817_v42 = vrot.slane %v799_v17, 4  ;;  %v2483_v0 = vld [vmem:[#allocation2 + $0x2a] sm:$0x1]  ;;  %v1015_v32 = vrot.slane %v2507_v13, 4 }
 0x102   : > { %v1965_v4 = vpop.f32.mrf.mxu0  ;;  %v1991_v26 = vpop.f32.mrf.mxu1  ;;  %v2487_v2 = vld [vmem:[#allocation2 + $0x2e] sm:$0x1]  ;;  %v2509_v14 = vld [vmem:[#allocation2 + $0x18] sm:$0x1]  ;;  %v2511_v15 = vld [vmem:[#allocation2 + $0x1a] sm:$0x1] }
 0x103   : > { %487 = vst.msk [vmem:[#allocation2 + $0x60] sm:$0xff] %vm474_vm2, %v456_v3  ;;  %v471_v5 = vadd.f32 %v1965_v4, %v2363_v18  ;;  %v2491_v3 = vld [vmem:[#allocation2 + $0x3a] sm:$0x1]  ;;  %v2493_v4 = vld [vmem:[#allocation2 + $0x3c] sm:$0x1]  ;;  %v884_v10 = vsel %vm517_vm6, %v883_v35, %v882_v46  ;;  %1180 = vst.msk [vmem:[#allocation2 + $0x18] sm:$0xff] %vm474_vm2, %v2447_v31 }
 0x104   : > { %v465_v9 = vpop.f32.mrf.mxu0  ;;  %v866_v21 = vld [vmem:[#allocation2 + $0x5b] sm:$0x1]  ;;  %v800_v24 = vld [vmem:[#allocation2 + $0x59] sm:$0x1]  ;;  %3140 = vst [vmem:[#allocation9_spill] sm:$0xff] %v2493_v4  ;;  %v1013_v4 = vrot.slane %v2479_v62, 5 }
 0x105   : > { %490 = vst.msk [vmem:[#allocation2 + $0x78] sm:$0xff] %vm474_vm2, %v471_v5  ;;  %v466_v12 = vadd.f32 %v2363_v18, %v465_v9  ;;  %v885_v45 = vrot.slane %v866_v21, 3  ;;  %v819_v51 = vrot.slane %v800_v24, 3  ;;  %v2495_v5 = vld [vmem:[#allocation2 + $0x3e] sm:$0x1] }
 0x106   : > { %v2517_v17 = vld [vmem:[#allocation2 + $0x48] sm:$0x1]  ;;  %v2519_v60 = vld [vmem:[#allocation2 + $0x4a] sm:$0x1]  ;;  %v2521_v19 = vld [vmem:[#allocation2 + $0x4c] sm:$0x1] }
 0x107   : > { %489 = vst.msk [vmem:[#allocation2 + $0x70] sm:$0xff] %vm474_vm2, %v466_v12  ;;  %v818_v12 = vsel %vm517_vm6, %v817_v42, %v816_v58  ;;  %3142 = vst [vmem:[#allocation11_spill] sm:$0xff] %v2521_v19  ;;  %v2523_v21 = vld [vmem:[#allocation2 + $0x4e] sm:$0x1]  ;;  %v2525_v22 = vld [vmem:[#allocation2 + $0x58] sm:$0x1]  ;;  %v886_v35 = vsel %vm520_vm7, %v885_v45, %v884_v10 }
 0x108   : > { %v2453_v34 = vld [vmem:[#allocation2 + $0x6b] sm:$0x1]  ;;  %v2455_v39 = vld [vmem:[#allocation2 + $0x69] sm:$0x1]  ;;  %v2527_v24 = vld [vmem:[#allocation2 + $0x5a] sm:$0x1] }
 0x109   : > { %v887_v29 = vrot.slane %v2453_v34, 2  ;;  %v821_v55 = vrot.slane %v2455_v39, 2  ;;  %v2529_v25 = vld [vmem:[#allocation2 + $0x5c] sm:$0x1]  ;;  %v2531_v28 = vld [vmem:[#allocation2 + $0x5e] sm:$0x1]  ;;  %v1174_v34 = vadd.f32 %v1991_v26, %v2363_v18  ;;  %v820_v39 = vsel %vm520_vm7, %v819_v51, %v818_v12 }
 0x10a   : > { %3143 = vst [vmem:[#allocation12_spill] sm:$0xff] %v2529_v25  ;;  %v2538_v42 = vld [vmem:[#allocation2 + $0x5f] sm:$0x1]  ;;  %v2540_v23 = vld [vmem:[#allocation2 + $0x6f] sm:$0x1]  ;;  %v1009_v19 = vrot.slane %v2475_v59, 7  ;;  %v2572_v59 = vadd.f32 %v2363_v18, %v2383_v36  ;;  %v2584_v36 = vadd.f32 %v2363_v18, %v2407_v50 }
 0x10b   : > { %v2542_v49 = vld [vmem:[#allocation2 + $0x68] sm:$0x1]  ;;  %v2544_v52 = vld [vmem:[#allocation2 + $0x6a] sm:$0x1]  ;;  %v2546_v54 = vld [vmem:[#allocation2 + $0x6c] sm:$0x1]  ;;  %v888_v51 = vsel %vm523_vm8, %v887_v29, %v886_v35  ;;  %v822_v12 = vsel %vm523_vm8, %v821_v55, %v820_v39 }
 0x10c   : > { %v868_v9 = vld [vmem:[#allocation2 + $0x7b] sm:$0x1]  ;;  %v802_v11 = vld [vmem:[#allocation2 + $0x79] sm:$0x1]  ;;  %3144 = vst [vmem:[#allocation13_spill] sm:$0xff] %v2546_v54  ;;  %v1011_v54 = vrot.slane %v2477_v61, 6  ;;  %v1010_v61 = vsel %vm508_vm3, %v1009_v19, %v2403_v47 }
 0x10d   : > { %v2548_v46 = vld [vmem:[#allocation2 + $0x6e] sm:$0x1]  ;;  %v2550_v58 = vld [vmem:[#allocation2 + $0x78] sm:$0x1]  ;;  %v2552_v6 = vld [vmem:[#allocation2 + $0x7a] sm:$0x1] }
 0x10e   : > { %v2554_v26 = vld [vmem:[#allocation2 + $0x7c] sm:$0x1]  ;;  %v2556_v45 = vld [vmem:[#allocation2 + $0x7e] sm:$0x1]  ;;  %v889_v10 = vrot.slane %v868_v9, 1  ;;  %v823_v25 = vrot.slane %v802_v11, 1  ;;  %v1012_v31 = vsel %vm511_vm4, %v1011_v54, %v1010_v61 }
 0x10f   : > { %3145 = vst [vmem:[#allocation14_spill] sm:$0xff] %v2554_v26  ;;  %3146 = vst [vmem:[#allocation15_spill] sm:$0xff] %v2556_v45  ;;  %v1000_v40 = vld [vmem:[#allocation2 + $0x7f] sm:$0x1]  ;;  %v1017_v29 = vrot.slane %v2538_v42, 3  ;;  %v1019_v9 = vrot.slane %v2540_v23, 2 }
 0x110   : > { %v890_v26 = vsel %vm526_vm9, %v889_v10, %v888_v51  ;;  %v824_v45 = vsel %vm526_vm9, %v823_v25, %v822_v12  ;;  %v929_v55 = vld [vmem:[#allocation2 + $0x2d] sm:$0x1]  ;;  %v930_v11 = vld [vmem:[#allocation2 + $0x3d] sm:$0x1]  ;;  %v1021_v62 = vrot.slane %v1000_v40, 1  ;;  %v943_v35 = vrot.slane %v928_v16, 7 }
 0x111   : > { %891 = vrot.lane.b32.xlu1 %v890_v26, %s2190_s28  ;;  %825 = vrot.lane.b32.xlu0 %v824_v45, %s2190_s28  ;;  %v931_v13 = vld [vmem:[#allocation2 + $0x4d] sm:$0x1]  ;;  %v932_v25 = vld [vmem:[#allocation2 + $0x5d] sm:$0x1]  ;;  %1182 = vst.msk [vmem:[#allocation2 + $0x28] sm:$0xff] %vm474_vm2, %v2467_v57  ;;  %1184 = vst.msk [vmem:[#allocation2 + $0x38] sm:$0xff] %vm474_vm2, %v2471_v44  ;;  %v1014_v40 = vsel %vm514_vm5, %v1013_v4, %v1012_v31  ;;  %v2600_v4 = vadd.f32 %v2363_v18, %v2416_v56 }
 0x112   : > { %v933_v39 = vld [vmem:[#allocation2 + $0x6d] sm:$0x1]  ;;  %v934_v42 = vld [vmem:[#allocation2 + $0x7d] sm:$0x1]  ;;  %v945_v23 = vrot.slane %v929_v55, 6  ;;  %v947_v47 = vrot.slane %v930_v11, 5  ;;  %v944_v57 = vsel %vm508_vm3, %v943_v35, %v2405_v48  ;;  %v1016_v19 = vsel %vm517_vm6, %v1015_v32, %v1014_v40 }
 0x113   : > { %1186 = vst.msk [vmem:[#allocation2 + $0x48] sm:$0xff] %vm474_vm2, %v2499_v7  ;;  %1188 = vst.msk [vmem:[#allocation2 + $0x58] sm:$0xff] %vm474_vm2, %v2503_v8  ;;  %v949_v44 = vrot.slane %v931_v13, 4  ;;  %v951_v50 = vrot.slane %v932_v25, 3  ;;  %v664_v16 = vld [vmem:[#allocation2 + $0x15] sm:$0x1]  ;;  %v2604_v48 = vadd.f32 %v2363_v18, %v2428_v1 }
 0x114   : > { %1190 = vst.msk [vmem:[#allocation2 + $0x68] sm:$0xff] %vm474_vm2, %v1164_v30  ;;  %1192 = vst.msk [vmem:[#allocation2 + $0x78] sm:$0xff] %vm474_vm2, %v1174_v34  ;;  %v946_v54 = vsel %vm511_vm4, %v945_v23, %v944_v57  ;;  %v953_v7 = vrot.slane %v933_v39, 2  ;;  %v955_v26 = vrot.slane %v934_v42, 1  ;;  %v665_v45 = vld [vmem:[#allocation2 + $0x25] sm:$0x1]  ;;  %v1018_v30 = vsel %vm520_vm7, %v1017_v29, %v1016_v19 }
 0x115   : > { %v666_v8 = vld [vmem:[#allocation2 + $0x35] sm:$0x1]  ;;  %v948_v34 = vsel %vm514_vm5, %v947_v47, %v946_v54  ;;  %v667_v51 = vld [vmem:[#allocation2 + $0x45] sm:$0x1]  ;;  %v1020_v12 = vsel %vm523_vm8, %v1019_v9, %v1018_v30  ;;  %v679_v56 = vrot.slane %v664_v16, 7  ;;  %v681_v13 = vrot.slane %v665_v45, 6  ;;  %v1168_v45 = vpop.f32.mrf.mxu1 }
 0x116   : > { %v668_v32 = vld [vmem:[#allocation2 + $0x55] sm:$0x1]  ;;  %v2608_v10 = vld [vmem:[#allocation2 + $0x65] sm:$0x1]  ;;  %v950_v55 = vsel %vm517_vm6, %v949_v44, %v948_v34  ;;  %v1022_v1 = vsel %vm526_vm9, %v1021_v62, %v1020_v12  ;;  %v683_v29 = vrot.slane %v666_v8, 5  ;;  %v685_v35 = vrot.slane %v667_v51, 4 }
 0x117   : > { %v663_v11 = vld [vmem:[#allocation2 + $0x5] sm:$0x1]  ;;  %v2612_v61 = vld [vmem:[#allocation2 + $0x75] sm:$0x1]  ;;  %v952_v25 = vsel %vm520_vm7, %v951_v50, %v950_v55  ;;  %v531_v31 = vld [vmem:[#allocation2 + $0x11] sm:$0x1]  ;;  %1023 = vrot.lane.b32.xlu1 %v1022_v1, %s2190_s28 }
 0x118   : > { %v532_v39 = vld [vmem:[#allocation2 + $0x21] sm:$0x1]  ;;  %v954_v42 = vsel %vm523_vm8, %v953_v7, %v952_v25  ;;  %v680_v9 = vsel %vm508_vm3, %v679_v56, %v663_v11  ;;  %v687_v23 = vrot.slane %v668_v32, 3  ;;  %v689_v47 = vrot.slane %v2608_v10, 2  ;;  %v533_v57 = vld [vmem:[#allocation2 + $0x31] sm:$0x1] }
 0x119   : > { %v530_v40 = vld [vmem:[#allocation2 + $0x1] sm:$0x1]  ;;  %v956_v62 = vsel %vm526_vm9, %v955_v26, %v954_v42  ;;  %v682_v50 = vsel %vm511_vm4, %v681_v13, %v680_v9  ;;  %v2625_v19 = vld [vmem:[#allocation2 + $0x51] sm:$0x1]  ;;  %v546_v7 = vrot.slane %v531_v31, 7  ;;  %v548_v34 = vrot.slane %v532_v39, 6 }
 0x11a   : > { %v2620_v44 = vld [vmem:[#allocation2 + $0x41] sm:$0x1]  ;;  %957 = vrot.lane.b32.xlu0 %v956_v62, %s2190_s28  ;;  %v684_v8 = vsel %vm514_vm5, %v683_v29, %v682_v50  ;;  %v2631_v30 = vld [vmem:[#allocation2 + $0x71] sm:$0x1]  ;;  %v550_v51 = vrot.slane %v533_v57, 5  ;;  %v554_v13 = vrot.slane %v2625_v19, 3 }
 0x11b   : > { %v2627_v54 = vld [vmem:[#allocation2 + $0x61] sm:$0x1]  ;;  %v552_v26 = vrot.slane %v2620_v44, 4  ;;  %v2634_v32 = vld [vmem:[#allocation2 + $0x10] sm:$0x1]  ;;  %v686_v11 = vsel %vm517_vm6, %v685_v35, %v684_v8  ;;  %v547_v56 = vsel %vm508_vm3, %v546_v7, %v530_v40  ;;  %v558_v16 = vrot.slane %v2631_v30, 1 }
 0x11c   : > { %3147 = vst [vmem:[#allocation16_spill] sm:$0xff] %v2634_v32  ;;  %v2636_v10 = vld [vmem:[#allocation2 + $0x12] sm:$0x1]  ;;  %v2638_v12 = vld [vmem:[#allocation2 + $0x14] sm:$0x1]  ;;  %v556_v1 = vrot.slane %v2627_v54, 2  ;;  %v688_v7 = vsel %vm520_vm7, %v687_v23, %v686_v11  ;;  %v549_v8 = vsel %vm511_vm4, %v548_v34, %v547_v56 }
 0x11d   : > { %3148 = vst [vmem:[#allocation17_spill] sm:$0xff] %v2636_v10  ;;  %v2640_v55 = vld [vmem:[#allocation2 + $0x16] sm:$0x1]  ;;  %v729_v25 = vld [vmem:[#allocation2 + $0x7] sm:$0x1] }
 0x11e   : > { %3149 = vst [vmem:[#allocation18_spill] sm:$0xff] %v2640_v55  ;;  %v730_v29 = vld [vmem:[#allocation2 + $0x17] sm:$0x1]  ;;  %v2646_v31 = vld [vmem:[#allocation2] sm:$0x1] }
 0x11f   : > { %3150 = vst [vmem:[#allocation19_spill] sm:$0xff] %v2646_v31  ;;  %v2648_v39 = vld [vmem:[#allocation2 + $0x2] sm:$0x1]  ;;  %v2650_v42 = vld [vmem:[#allocation2 + $0x4] sm:$0x1]  ;;  %v745_v10 = vrot.slane %v730_v29, 7 }
 0x120   : > { %3151 = vst [vmem:[#allocation20_spill] sm:$0xff] %v2648_v39  ;;  %3152 = vst [vmem:[#allocation21_spill] sm:$0xff] %v2650_v42  ;;  %v2652_v9 = vld [vmem:[#allocation2 + $0x6] sm:$0x1]  ;;  %v2654_v57 = vld [vmem:[#allocation2 + $0x20] sm:$0x1] }
 0x121   : > { %3153 = vst [vmem:[#allocation22_spill] sm:$0xff] %v2652_v9  ;;  %3154 = vst [vmem:[#allocation23_spill] sm:$0xff] %v2654_v57  ;;  %v2656_v44 = vld [vmem:[#allocation2 + $0x22] sm:$0x1]  ;;  %v2658_v35 = vld [vmem:[#allocation2 + $0x24] sm:$0x1] }
 0x122   : > { %3155 = vst [vmem:[#allocation24_spill] sm:$0xff] %v2656_v44  ;;  %v2660_v40 = vld [vmem:[#allocation2 + $0x26] sm:$0x1]  ;;  %v2662_v62 = vld [vmem:[#allocation2 + $0x30] sm:$0x1] }
 0x123   : > { %3156 = vst [vmem:[#allocation25_spill] sm:$0xff] %v2660_v40  ;;  %3157 = vst [vmem:[#allocation26_spill] sm:$0xff] %v2662_v62  ;;  %v2664_v50 = vld [vmem:[#allocation2 + $0x32] sm:$0x1]  ;;  %v2666_v19 = vld [vmem:[#allocation2 + $0x34] sm:$0x1] }
 0x124   : > { %3158 = vst [vmem:[#allocation27_spill] sm:$0xff] %v2664_v50  ;;  %v2668_v54 = vld [vmem:[#allocation2 + $0x36] sm:$0x1]  ;;  %v731_v39 = vld [vmem:[#allocation2 + $0x27] sm:$0x1] }
 0x125   : > { %3159 = vst [vmem:[#allocation28_spill] sm:$0xff] %v2668_v54  ;;  %v732_v44 = vld [vmem:[#allocation2 + $0x37] sm:$0x1]  ;;  %v2673_v9 = vld [vmem:[#allocation2 + $0x40] sm:$0x1] }
 0x126   : > { %3160 = vst [vmem:[#allocation29_spill] sm:$0xff] %v2673_v9  ;;  %v2675_v40 = vld [vmem:[#allocation2 + $0x42] sm:$0x1]  ;;  %v2677_v55 = vld [vmem:[#allocation2 + $0x44] sm:$0x1] }
 0x127   : > { %3161 = vst [vmem:[#allocation30_spill] sm:$0xff] %v2675_v40  ;;  %v2679_v50 = vld [vmem:[#allocation2 + $0x46] sm:$0x1]  ;;  %v2681_v31 = vld [vmem:[#allocation2 + $0x50] sm:$0x1]  ;;  %v1159_v40 = vadd.f32 %v2363_v18, %v2439_v20 }
 0x128   : > { %3162 = vst [vmem:[#allocation31_spill] sm:$0xff] %v2679_v50  ;;  %3163 = vst [vmem:[#allocation32_spill] sm:$0xff] %v2681_v31  ;;  %v2683_v54 = vld [vmem:[#allocation2 + $0x52] sm:$0x1]  ;;  %v2685_v23 = vld [vmem:[#allocation2 + $0x54] sm:$0x1]  ;;  %v1169_v50 = vadd.f32 %v2363_v18, %v1168_v45  ;;  %v690_v31 = vsel %vm523_vm8, %v689_v47, %v688_v7  ;;  %v746_v45 = vsel %vm508_vm3, %v745_v10, %v729_v25 }
 0x129   : > { %3164 = vst [vmem:[#allocation33_spill] sm:$0xff] %v2683_v54  ;;  %v2687_v34 = vld [vmem:[#allocation2 + $0x56] sm:$0x1]  ;;  %v2689_v30 = vld [vmem:[#allocation2 + $0x60] sm:$0x1]  ;;  %v551_v54 = vsel %vm514_vm5, %v550_v51, %v549_v8  ;;  %v747_v51 = vrot.slane %v731_v39, 6 }
 0x12a   : > { %3165 = vst [vmem:[#allocation34_spill] sm:$0xff] %v2687_v34  ;;  %3166 = vst [vmem:[#allocation35_spill] sm:$0xff] %v2689_v30  ;;  %v2691_v11 = vld [vmem:[#allocation2 + $0x62] sm:$0x1]  ;;  %v2693_v56 = vld [vmem:[#allocation2 + $0x64] sm:$0x1]  ;;  %v553_v18 = vsel %vm517_vm6, %v552_v26, %v551_v54 }
 0x12b   : > { %3167 = vst [vmem:[#allocation36_spill] sm:$0xff] %v2691_v11  ;;  %v2695_v29 = vld [vmem:[#allocation2 + $0x66] sm:$0x1]  ;;  %v733_v9 = vld [vmem:[#allocation2 + $0x47] sm:$0x1]  ;;  %v555_v8 = vsel %vm520_vm7, %v554_v13, %v553_v18  ;;  %v748_v26 = vsel %vm511_vm4, %v747_v51, %v746_v45  ;;  %v845_v45 = vrot.slane %v2511_v15, 7 }
 0x12c   : > { %3168 = vst [vmem:[#allocation37_spill] sm:$0xff] %v2695_v29  ;;  %v734_v62 = vld [vmem:[#allocation2 + $0x57] sm:$0x1]  ;;  %v735_v34 = vld [vmem:[#allocation2 + $0x67] sm:$0x1]  ;;  %v3172_v29 = vrot.slane %v2612_v61, 1  ;;  %v557_v61 = vsel %vm523_vm8, %v556_v1, %v555_v8 }
 0x12d   : > { %v2702_v57 = vld [vmem:[#allocation2 + $0x70] sm:$0x1]  ;;  %v2704_v30 = vld [vmem:[#allocation2 + $0x72] sm:$0x1]  ;;  %v2706_v11 = vld [vmem:[#allocation2 + $0x74] sm:$0x1]  ;;  %v559_v13 = vsel %vm526_vm9, %v558_v16, %v557_v61 }
 0x12e   : > { %3169 = vst [vmem:[#allocation38_spill] sm:$0xff] %v2702_v57  ;;  %3170 = vst [vmem:[#allocation39_spill] sm:$0xff] %v2704_v30  ;;  %v2708_v32 = vld [vmem:[#allocation2 + $0x76] sm:$0x1]  ;;  %v692_v20 = vsel %vm526_vm9, %v3172_v29, %v690_v31  ;;  %v736_v47 = vld [vmem:[#allocation2 + $0x77] sm:$0x1]  ;;  %560 = vrot.lane.b32.xlu0 %v559_v13, %s2190_s28 }
 0x12f   : > { %3171 = vst [vmem:[#allocation40_spill] sm:$0xff] %v2706_v11  ;;  %v597_v7 = vld [vmem:[#allocation2 + $0x3] sm:$0x1]  ;;  %693 = vrot.lane.b32.xlu1 %v692_v20, %s2190_s28  ;;  %v749_v30 = vrot.slane %v732_v44, 5  ;;  %v751_v57 = vrot.slane %v733_v9, 4  ;;  %v753_v42 = vrot.slane %v734_v62, 3 }
 0x130   : > { %v598_v11 = vld [vmem:[#allocation2 + $0x13] sm:$0x1]  ;;  %1177 = vst.msk [vmem:[#allocation2] sm:$0xff] %vm474_vm2, %v2443_v27  ;;  %v755_v31 = vrot.slane %v735_v34, 2  ;;  %v757_v54 = vrot.slane %v736_v47, 1 }
 0x131   : > { %v599_v10 = vld [vmem:[#allocation2 + $0x23] sm:$0x1]  ;;  %v600_v25 = vld [vmem:[#allocation2 + $0x33] sm:$0x1]  ;;  %1179 = vst.msk [vmem:[#allocation2 + $0x10] sm:$0xff] %vm474_vm2, %v2451_v33  ;;  %v750_v39 = vsel %vm514_vm5, %v749_v30, %v748_v26  ;;  %v613_v34 = vrot.slane %v598_v11, 7 }
 0x132   : > { %v601_v9 = vld [vmem:[#allocation2 + $0x43] sm:$0x1]  ;;  %v602_v44 = vld [vmem:[#allocation2 + $0x53] sm:$0x1]  ;;  %1181 = vst.msk [vmem:[#allocation2 + $0x20] sm:$0xff] %vm474_vm2, %v2572_v59  ;;  %1183 = vst.msk [vmem:[#allocation2 + $0x30] sm:$0xff] %vm474_vm2, %v2584_v36  ;;  %v752_v27 = vsel %vm517_vm6, %v751_v57, %v750_v39 }
 0x133   : > { %v603_v62 = vld [vmem:[#allocation2 + $0x63] sm:$0x1]  ;;  %v604_v1 = vld [vmem:[#allocation2 + $0x73] sm:$0x1]  ;;  %v615_v33 = vrot.slane %v599_v10, 6  ;;  %v617_v29 = vrot.slane %v600_v25, 5  ;;  %v754_v59 = vsel %vm520_vm7, %v753_v42, %v752_v27  ;;  %v614_v20 = vsel %vm508_vm3, %v613_v34, %v597_v7 }
 0x134   : > { %1185 = vst.msk [vmem:[#allocation2 + $0x40] sm:$0xff] %vm474_vm2, %v2600_v4  ;;  %1187 = vst.msk [vmem:[#allocation2 + $0x50] sm:$0xff] %vm474_vm2, %v2604_v48  ;;  %v619_v16 = vrot.slane %v601_v9, 4  ;;  %v621_v36 = vrot.slane %v602_v44, 3  ;;  %v623_v30 = vrot.slane %v603_v62, 2  ;;  %v756_v11 = vsel %vm523_vm8, %v755_v31, %v754_v59 }
 0x135   : > { %1189 = vst.msk [vmem:[#allocation2 + $0x60] sm:$0xff] %vm474_vm2, %v1159_v40  ;;  %1191 = vst.msk [vmem:[#allocation2 + $0x70] sm:$0xff] %vm474_vm2, %v1169_v50  ;;  %v1555_v57 = vld [vmem:[#allocation2 + $0xb] sm:$0x1]  ;;  %v625_v18 = vrot.slane %v604_v1, 1  ;;  %v758_v48 = vsel %vm526_vm9, %v757_v54, %v756_v11  ;;  %v616_v40 = vsel %vm511_vm4, %v615_v33, %v614_v20 }
 0x136   : > { %v1556_v47 = vld [vmem:[#allocation2 + $0x1b] sm:$0x1]  ;;  %v1557_v4 = vld [vmem:[#allocation2 + $0x2b] sm:$0x1]  ;;  %759 = vrot.lane.b32.xlu1 %v758_v48, %s2190_s28  ;;  %v618_v50 = vsel %vm514_vm5, %v617_v29, %v616_v40  ;;  %v1489_v9 = vld [vmem:[#allocation2 + $0x9] sm:$0x1] }
 0x137   : > { %v1558_v42 = vld [vmem:[#allocation2 + $0x3b] sm:$0x1]  ;;  %v1559_v51 = vld [vmem:[#allocation2 + $0x4b] sm:$0x1]  ;;  %v1571_v31 = vrot.slane %v1556_v47, 7  ;;  %v1573_v7 = vrot.slane %v1557_v4, 6  ;;  %v620_v10 = vsel %vm517_vm6, %v619_v16, %v618_v50 }
 0x138   : > { %v1560_v8 = vld [vmem:[#allocation2 + $0x5b] sm:$0x1]  ;;  %v1561_v61 = vld [vmem:[#allocation2 + $0x6b] sm:$0x1]  ;;  %v1575_v25 = vrot.slane %v1558_v42, 5  ;;  %v1577_v13 = vrot.slane %v1559_v51, 4  ;;  %v622_v54 = vsel %vm520_vm7, %v621_v36, %v620_v10 }
 0x139   : > { %v1562_v26 = vld [vmem:[#allocation2 + $0x7b] sm:$0x1]  ;;  %v1579_v39 = vrot.slane %v1560_v8, 3  ;;  %v1572_v44 = vsel %vm508_vm3, %v1571_v31, %v1555_v57  ;;  %v1581_v62 = vrot.slane %v1561_v61, 2  ;;  %v1490_v1 = vld [vmem:[#allocation2 + $0x19] sm:$0x1]  ;;  %v624_v33 = vsel %vm523_vm8, %v623_v30, %v622_v54 }
 0x13a   : > { %v1583_v27 = vrot.slane %v1562_v26, 1  ;;  %v1491_v34 = vld [vmem:[#allocation2 + $0x29] sm:$0x1]  ;;  %v1574_v29 = vsel %vm511_vm4, %v1573_v7, %v1572_v44  ;;  %v1492_v59 = vld [vmem:[#allocation2 + $0x39] sm:$0x1]  ;;  %v626_v16 = vsel %vm526_vm9, %v625_v18, %v624_v33  ;;  %v1505_v36 = vrot.slane %v1490_v1, 7 }
 0x13b   : > { %v1493_v11 = vld [vmem:[#allocation2 + $0x49] sm:$0x1]  ;;  %v1494_v20 = vld [vmem:[#allocation2 + $0x59] sm:$0x1]  ;;  %v1576_v47 = vsel %vm514_vm5, %v1575_v25, %v1574_v29  ;;  %v1507_v40 = vrot.slane %v1491_v34, 6  ;;  %627 = vrot.lane.b32.xlu0 %v626_v16, %s2190_s28  ;;  %v1509_v42 = vrot.slane %v1492_v59, 5 }
 0x13c   : > { %v1495_v4 = vld [vmem:[#allocation2 + $0x69] sm:$0x1]  ;;  %v1496_v48 = vld [vmem:[#allocation2 + $0x79] sm:$0x1]  ;;  %v1578_v57 = vsel %vm517_vm6, %v1577_v13, %v1576_v47  ;;  %v1511_v51 = vrot.slane %v1493_v11, 4  ;;  %v1513_v30 = vrot.slane %v1494_v20, 3  ;;  %v1506_v61 = vsel %vm508_vm3, %v1505_v36, %v1489_v9 }
 0x13d   : > { %v1291_v8 = vld [vmem:[#allocation2 + $0x3] sm:$0x1]  ;;  %v1580_v50 = vsel %vm520_vm7, %v1579_v39, %v1578_v57  ;;  %v1515_v26 = vrot.slane %v1495_v4, 2  ;;  %v1517_v18 = vrot.slane %v1496_v48, 1  ;;  %v1292_v31 = vld [vmem:[#allocation2 + $0x13] sm:$0x1]  ;;  %v1508_v25 = vsel %vm511_vm4, %v1507_v40, %v1506_v61 }
 0x13e   : > { %v1293_v7 = vld [vmem:[#allocation2 + $0x23] sm:$0x1]  ;;  %v1582_v10 = vsel %vm523_vm8, %v1581_v62, %v1580_v50  ;;  %v1294_v54 = vld [vmem:[#allocation2 + $0x33] sm:$0x1]  ;;  %v1510_v34 = vsel %vm514_vm5, %v1509_v42, %v1508_v25  ;;  %v1307_v39 = vrot.slane %v1292_v31, 7 }
 0x13f   : > { %v1295_v44 = vld [vmem:[#allocation2 + $0x43] sm:$0x1]  ;;  %v1296_v1 = vld [vmem:[#allocation2 + $0x53] sm:$0x1]  ;;  %v1584_v13 = vsel %vm526_vm9, %v1583_v27, %v1582_v10  ;;  %v1309_v59 = vrot.slane %v1293_v7, 6  ;;  %v1512_v9 = vsel %vm517_vm6, %v1511_v51, %v1510_v34  ;;  %v1311_v11 = vrot.slane %v1294_v54, 5 }
 0x140   : > { %v1297_v33 = vld [vmem:[#allocation2 + $0x63] sm:$0x1]  ;;  %v1298_v29 = vld [vmem:[#allocation2 + $0x73] sm:$0x1]  ;;  %1585 = vrot.lane.b32.xlu1 %v1584_v13, %s2190_s28  ;;  %v1313_v20 = vrot.slane %v1295_v44, 4  ;;  %v1315_v62 = vrot.slane %v1296_v1, 3  ;;  %v1514_v47 = vsel %vm520_vm7, %v1513_v30, %v1512_v9  ;;  %v1308_v4 = vsel %vm508_vm3, %v1307_v39, %v1291_v8 }
 0x141   : > { %v1225_v16 = vld [vmem:[#allocation2 + $0x1] sm:$0x1]  ;;  %v1317_v48 = vrot.slane %v1297_v33, 2  ;;  %v1319_v27 = vrot.slane %v1298_v29, 1  ;;  %v1226_v36 = vld [vmem:[#allocation2 + $0x11] sm:$0x1]  ;;  %v1516_v57 = vsel %vm523_vm8, %v1515_v26, %v1514_v47  ;;  %v1310_v42 = vsel %vm511_vm4, %v1309_v59, %v1308_v4 }
 0x142   : > { %v1227_v40 = vld [vmem:[#allocation2 + $0x21] sm:$0x1]  ;;  %v1228_v50 = vld [vmem:[#allocation2 + $0x31] sm:$0x1]  ;;  %v1518_v51 = vsel %vm526_vm9, %v1517_v18, %v1516_v57  ;;  %v1312_v7 = vsel %vm514_vm5, %v1311_v11, %v1310_v42  ;;  %v1241_v30 = vrot.slane %v1226_v36, 7 }
 0x143   : > { %v1229_v61 = vld [vmem:[#allocation2 + $0x41] sm:$0x1]  ;;  %v1230_v31 = vld [vmem:[#allocation2 + $0x51] sm:$0x1]  ;;  %v1243_v54 = vrot.slane %v1227_v40, 6  ;;  %1519 = vrot.lane.b32.xlu0 %v1518_v51, %s2190_s28  ;;  %v1314_v8 = vsel %vm517_vm6, %v1313_v20, %v1312_v7  ;;  %v1245_v44 = vrot.slane %v1228_v50, 5 }
 0x144   : > { %v1231_v10 = vld [vmem:[#allocation2 + $0x61] sm:$0x1]  ;;  %v1232_v25 = vld [vmem:[#allocation2 + $0x71] sm:$0x1]  ;;  %v1247_v1 = vrot.slane %v1229_v61, 4  ;;  %v1249_v26 = vrot.slane %v1230_v31, 3  ;;  %v1316_v34 = vsel %vm520_vm7, %v1315_v62, %v1314_v8  ;;  %v1242_v33 = vsel %vm508_vm3, %v1241_v30, %v1225_v16 }
 0x145   : > { %v1423_v13 = vld [vmem:[#allocation2 + $0x7] sm:$0x1]  ;;  %v1251_v29 = vrot.slane %v1231_v10, 2  ;;  %v1253_v18 = vrot.slane %v1232_v25, 1  ;;  %v1424_v39 = vld [vmem:[#allocation2 + $0x17] sm:$0x1]  ;;  %v1318_v9 = vsel %vm523_vm8, %v1317_v48, %v1316_v34  ;;  %v1244_v11 = vsel %vm511_vm4, %v1243_v54, %v1242_v33 }
 0x146   : > { %v1425_v59 = vld [vmem:[#allocation2 + $0x27] sm:$0x1]  ;;  %v1426_v47 = vld [vmem:[#allocation2 + $0x37] sm:$0x1]  ;;  %v1320_v20 = vsel %vm526_vm9, %v1319_v27, %v1318_v9  ;;  %v1246_v40 = vsel %vm514_vm5, %v1245_v44, %v1244_v11  ;;  %v1439_v62 = vrot.slane %v1424_v39, 7 }
 0x147   : > { %v1427_v4 = vld [vmem:[#allocation2 + $0x47] sm:$0x1]  ;;  %v1428_v36 = vld [vmem:[#allocation2 + $0x57] sm:$0x1]  ;;  %v1441_v50 = vrot.slane %v1425_v59, 6  ;;  %1321 = vrot.lane.b32.xlu1 %v1320_v20, %s2190_s28  ;;  %v1248_v16 = vsel %vm517_vm6, %v1247_v1, %v1246_v40  ;;  %v1443_v61 = vrot.slane %v1426_v47, 5 }
 0x148   : > { %v1429_v57 = vld [vmem:[#allocation2 + $0x67] sm:$0x1]  ;;  %v1430_v42 = vld [vmem:[#allocation2 + $0x77] sm:$0x1]  ;;  %v1445_v31 = vrot.slane %v1427_v4, 4  ;;  %v1447_v48 = vrot.slane %v1428_v36, 3  ;;  %v1250_v7 = vsel %vm520_vm7, %v1249_v26, %v1248_v16  ;;  %v1440_v10 = vsel %vm508_vm3, %v1439_v62, %v1423_v13 }
 0x149   : > { %v1357_v51 = vld [vmem:[#allocation2 + $0x5] sm:$0x1]  ;;  %v1449_v25 = vrot.slane %v1429_v57, 2  ;;  %v1451_v27 = vrot.slane %v1430_v42, 1  ;;  %v1358_v30 = vld [vmem:[#allocation2 + $0x15] sm:$0x1]  ;;  %v1252_v8 = vsel %vm523_vm8, %v1251_v29, %v1250_v7  ;;  %v1442_v44 = vsel %vm511_vm4, %v1441_v50, %v1440_v10 }
 0x14a   : > { %v1359_v54 = vld [vmem:[#allocation2 + $0x25] sm:$0x1]  ;;  %v1360_v34 = vld [vmem:[#allocation2 + $0x35] sm:$0x1]  ;;  %v1254_v1 = vsel %vm526_vm9, %v1253_v18, %v1252_v8  ;;  %v1444_v59 = vsel %vm514_vm5, %v1443_v61, %v1442_v44  ;;  %v1373_v26 = vrot.slane %v1358_v30, 7 }
 0x14b   : > { %v1361_v33 = vld [vmem:[#allocation2 + $0x45] sm:$0x1]  ;;  %v1362_v39 = vld [vmem:[#allocation2 + $0x55] sm:$0x1]  ;;  %v1375_v47 = vrot.slane %v1359_v54, 6  ;;  %1255 = vrot.lane.b32.xlu0 %v1254_v1, %s2190_s28  ;;  %v1446_v13 = vsel %vm517_vm6, %v1445_v31, %v1444_v59  ;;  %v1377_v4 = vrot.slane %v1360_v34, 5 }
 0x14c   : > { %v1363_v9 = vld [vmem:[#allocation2 + $0x65] sm:$0x1]  ;;  %v1364_v11 = vld [vmem:[#allocation2 + $0x75] sm:$0x1]  ;;  %v1379_v36 = vrot.slane %v1361_v33, 4  ;;  %v1381_v29 = vrot.slane %v1362_v39, 3  ;;  %v1448_v40 = vsel %vm520_vm7, %v1447_v48, %v1446_v13  ;;  %v1374_v57 = vsel %vm508_vm3, %v1373_v26, %v1357_v51 }
 0x14d   : > { %v1687_v20 = vld [vmem:[#allocation2 + $0xf] sm:$0x1]  ;;  %v1383_v42 = vrot.slane %v1363_v9, 2  ;;  %v1385_v18 = vrot.slane %v1364_v11, 1  ;;  %v1688_v62 = vld [vmem:[#allocation2 + $0x1f] sm:$0x1]  ;;  %v1450_v16 = vsel %vm523_vm8, %v1449_v25, %v1448_v40  ;;  %v1376_v61 = vsel %vm511_vm4, %v1375_v47, %v1374_v57 }
 0x14e   : > { %v1689_v50 = vld [vmem:[#allocation2 + $0x2f] sm:$0x1]  ;;  %v1690_v7 = vld [vmem:[#allocation2 + $0x3f] sm:$0x1]  ;;  %v1452_v31 = vsel %vm526_vm9, %v1451_v27, %v1450_v16  ;;  %v1378_v54 = vsel %vm514_vm5, %v1377_v4, %v1376_v61  ;;  %v1703_v48 = vrot.slane %v1688_v62, 7 }
 0x14f   : > { %v1691_v10 = vld [vmem:[#allocation2 + $0x4f] sm:$0x1]  ;;  %v1692_v30 = vld [vmem:[#allocation2 + $0x5f] sm:$0x1]  ;;  %v1705_v34 = vrot.slane %v1689_v50, 6  ;;  %1453 = vrot.lane.b32.xlu1 %v1452_v31, %s2190_s28  ;;  %v1380_v51 = vsel %vm517_vm6, %v1379_v36, %v1378_v54  ;;  %v1707_v33 = vrot.slane %v1690_v7, 5  ;;  %v846_v36 = vsel %vm508_vm3, %v845_v45, %v2387_v38 }
 0x150   : > { %v1693_v8 = vld [vmem:[#allocation2 + $0x6f] sm:$0x1]  ;;  %v1694_v44 = vld [vmem:[#allocation2 + $0x7f] sm:$0x1]  ;;  %v1709_v39 = vrot.slane %v1691_v10, 4  ;;  %v1711_v25 = vrot.slane %v1692_v30, 3  ;;  %v1382_v59 = vsel %vm520_vm7, %v1381_v29, %v1380_v51  ;;  %v1704_v9 = vsel %vm508_vm3, %v1703_v48, %v1687_v20 }
 0x151   : > { %v1621_v1 = vld [vmem:[#allocation2 + $0xd] sm:$0x1]  ;;  %v1713_v11 = vrot.slane %v1693_v8, 2  ;;  %v1715_v27 = vrot.slane %v1694_v44, 1  ;;  %v1622_v26 = vld [vmem:[#allocation2 + $0x1d] sm:$0x1]  ;;  %v1384_v13 = vsel %vm523_vm8, %v1383_v42, %v1382_v59  ;;  %v1706_v4 = vsel %vm511_vm4, %v1705_v34, %v1704_v9 }
 0x152   : > { %v1623_v47 = vld [vmem:[#allocation2 + $0x2d] sm:$0x1]  ;;  %v1624_v40 = vld [vmem:[#allocation2 + $0x3d] sm:$0x1]  ;;  %v1386_v29 = vsel %vm526_vm9, %v1385_v18, %v1384_v13  ;;  %v1708_v20 = vsel %vm514_vm5, %v1707_v33, %v1706_v4  ;;  %v1637_v61 = vrot.slane %v1622_v26, 7  ;;  %v847_v44 = vrot.slane %v2483_v0, 6 }
 0x153   : > { %v1625_v57 = vld [vmem:[#allocation2 + $0x4d] sm:$0x1]  ;;  %v1626_v62 = vld [vmem:[#allocation2 + $0x5d] sm:$0x1]  ;;  %v1639_v7 = vrot.slane %v1623_v47, 6  ;;  %1387 = vrot.lane.b32.xlu0 %v1386_v29, %s2190_s28  ;;  %v1710_v42 = vsel %vm517_vm6, %v1709_v39, %v1708_v20  ;;  %v1641_v10 = vrot.slane %v1624_v40, 5 }
 0x154   : > { %v1627_v50 = vld [vmem:[#allocation2 + $0x6d] sm:$0x1]  ;;  %v1628_v16 = vld [vmem:[#allocation2 + $0x7d] sm:$0x1]  ;;  %v1643_v30 = vrot.slane %v1625_v57, 4  ;;  %v1645_v31 = vrot.slane %v1626_v62, 3  ;;  %v1712_v15 = vsel %vm520_vm7, %v1711_v25, %v1710_v42  ;;  %v1638_v38 = vsel %vm508_vm3, %v1637_v61, %v1621_v1 }
 0x155   : > { %v1647_v45 = vrot.slane %v1627_v50, 2  ;;  %v1649_v18 = vrot.slane %v1628_v16, 1  ;;  %v1714_v54 = vsel %vm523_vm8, %v1713_v11, %v1712_v15  ;;  %v1640_v8 = vsel %vm511_vm4, %v1639_v7, %v1638_v38  ;;  %v3173_v20 = vld [vmem:[#allocation15_spill] sm:$0xff]  ;;  %v3174_v7 = vld [vmem:[#allocation10_spill] sm:$0xff] }
 0x156   : > { %v849_v48 = vrot.slane %v2491_v3, 5  ;;  %v1716_v34 = vsel %vm526_vm9, %v1715_v27, %v1714_v54  ;;  %v1642_v51 = vsel %vm514_vm5, %v1641_v10, %v1640_v8  ;;  %v851_v33 = vrot.slane %v2519_v60, 4  ;;  %v3177_v15 = vld [vmem:[#allocation11_spill] sm:$0xff]  ;;  %v3180_v8 = vld [vmem:[#allocation13_spill] sm:$0xff] }
 0x157   : > { %v853_v39 = vrot.slane %v2527_v24, 3  ;;  %1717 = vrot.lane.b32.xlu1 %v1716_v34, %s2190_s28  ;;  %v1644_v25 = vsel %vm517_vm6, %v1643_v30, %v1642_v51  ;;  %v848_v1 = vsel %vm511_vm4, %v847_v44, %v846_v36  ;;  %v855_v59 = vrot.slane %v2544_v52, 2  ;;  %v3176_v30 = vld [vmem:[#allocation9_spill] sm:$0xff]  ;;  %v3178_v38 = vld [vmem:[#allocation7_spill] sm:$0xff]  ;;  %v3181_v51 = vld [vmem:[#allocation14_spill] sm:$0xff] }
 0x158   : > { %v857_v0 = vrot.slane %v2552_v6, 1  ;;  %v1646_v3 = vsel %vm520_vm7, %v1645_v31, %v1644_v25  ;;  %v850_v9 = vsel %vm514_vm5, %v849_v48, %v848_v1  ;;  %v779_v60 = vrot.slane %v2509_v14, 7 }
 0x159   : > { %v781_v24 = vrot.slane %v2481_v63, 6  ;;  %v1648_v11 = vsel %vm523_vm8, %v1647_v45, %v1646_v3  ;;  %v852_v27 = vsel %vm517_vm6, %v851_v33, %v850_v9  ;;  %v783_v26 = vrot.slane %v2489_v43, 5 }
 0x15a   : > { %v785_v52 = vrot.slane %v2517_v17, 4  ;;  %v1650_v47 = vsel %vm526_vm9, %v1649_v18, %v1648_v11  ;;  %v854_v6 = vsel %vm520_vm7, %v853_v39, %v852_v27  ;;  %v780_v13 = vsel %vm508_vm3, %v779_v60, %v2385_v37  ;;  %v3179_v18 = vld [vmem:[#allocation12_spill] sm:$0xff] }
 0x15b   : > { %v787_v4 = vrot.slane %v2525_v22, 3  ;;  %1651 = vrot.lane.b32.xlu0 %v1650_v47, %s2190_s28  ;;  %v856_v63 = vsel %vm523_vm8, %v855_v59, %v854_v6  ;;  %v782_v14 = vsel %vm511_vm4, %v781_v24, %v780_v13  ;;  %v789_v40 = vrot.slane %v2542_v49, 2  ;;  %v3182_v27 = vld [vmem:[#allocation40_spill] sm:$0xff]  ;;  %s2080_s28 = scalar_lea.vmem %s1743_s27, 2048 }
 0x15c   : > { %v791_v43 = vrot.slane %v2550_v58, 1  ;;  %v858_v17 = vsel %vm526_vm9, %v857_v0, %v856_v63  ;;  %v784_v57 = vsel %vm514_vm5, %v783_v26, %v782_v14  ;;  %v977_v62 = vrot.slane %v2515_v53, 7  ;;  %v3184_v6 = vld [vmem:[#allocation16_spill] sm:$0xff]  ;;  %v3186_v14 = vld [vmem:[#allocation26_spill] sm:$0xff]  ;;  %p2081_p2 = scmp.ne.s32.totalorder %s1743_s27, %s2080_s28  ;;  %p2088_p7 = scmp.lt.s32.totalorder %s2086_s7, %s2080_s28 }
 0x15d   : > { %v979_v37 = vrot.slane %v2487_v2, 6  ;;  %860 = vst.msk [vmem:[%s2846_s6 + $0x28] sm:$0xff] %vm474_vm2, %v858_v17  ;;  %v786_v22 = vsel %vm517_vm6, %v785_v52, %v784_v57  ;;  %v981_v49 = vrot.slane %v2495_v5, 5  ;;  %v983_v58 = vrot.slane %v2523_v21, 4  ;;  %v3175_v5 = vld [vmem:[#allocation8_spill] sm:$0xff] }
 0x15e   : > { %v985_v36 = vrot.slane %v2531_v28, 3  ;;  %v788_v29 = vsel %vm520_vm7, %v787_v4, %v786_v22  ;;  %v978_v53 = vsel %vm508_vm3, %v977_v62, %v2393_v41  ;;  %v987_v2 = vrot.slane %v2548_v46, 2  ;;  %v3188_v57 = vld [vmem:[#allocation32_spill] sm:$0xff]  ;;  %p2082_p3 = pnand %p2081_p2, %p2278_p4  ;;  %p2089_p8 = por %p2088_p7, %p2087_p6 }
 0x15f   : > { %v989_v50 = vrot.slane %v3173_v20, 1  ;;  %v790_v16 = vsel %vm523_vm8, %v789_v40, %v788_v29  ;;  %v980_v61 = vsel %vm511_vm4, %v979_v37, %v978_v53  ;;  %v911_v42 = vrot.slane %v3174_v7, 7  ;;  %v3189_v37 = vld [vmem:[#allocation35_spill] sm:$0xff] }
 0x160   : > { %v913_v10 = vrot.slane %v3175_v5, 6  ;;  %v792_v21 = vsel %vm526_vm9, %v791_v43, %v790_v16  ;;  %v982_v28 = vsel %vm514_vm5, %v981_v49, %v980_v61  ;;  %v915_v31 = vrot.slane %v3176_v30, 5  ;;  %v3190_v49 = vld [vmem:[#allocation38_spill] sm:$0xff]  ;;  %v3191_v29 = vld [vmem:[#allocation19_spill] sm:$0xff]  ;;  %p2083_p5 = pneg %p2082_p3 }
 0x161   : > { %v917_v41 = vrot.slane %v3177_v15, 4  ;;  %794 = vst.msk [vmem:[%s2846_s6 + $0x20] sm:$0xff] %vm474_vm2, %v792_v21  ;;  %v984_v46 = vsel %vm517_vm6, %v983_v58, %v982_v28  ;;  %v912_v45 = vsel %vm508_vm3, %v911_v42, %v3178_v38  ;;  %v919_v54 = vrot.slane %v3179_v18, 3  ;;  %v3194_v42 = vld [vmem:[#allocation28_spill] sm:$0xff]  ;;  %v3198_v18 = vld [vmem:[#allocation37_spill] sm:$0xff] }
 0x162   : > { %v921_v44 = vrot.slane %v3180_v8, 2  ;;  %v986_v48 = vsel %vm520_vm7, %v985_v36, %v984_v46  ;;  %v914_v34 = vsel %vm511_vm4, %v913_v10, %v912_v45  ;;  %v923_v33 = vrot.slane %v3181_v51, 1  ;;  %v3195_v10 = vld [vmem:[#allocation31_spill] sm:$0xff]  ;;  %p2090_p10 = pnand %p2089_p8, %p2083_p5 }
 0x163   : > { %v647_v39 = vrot.slane %v2638_v12, 7  ;;  %v988_v25 = vsel %vm523_vm8, %v987_v2, %v986_v48  ;;  %v916_v1 = vsel %vm514_vm5, %v915_v31, %v914_v34  ;;  %v649_v59 = vrot.slane %v2658_v35, 6  ;;  %v3183_v35 = vld [vmem:[#allocation21_spill] sm:$0xff]  ;;  %v3192_v2 = vld [vmem:[#allocation18_spill] sm:$0xff]  ;;  %v1525_v48 = vld [vmem:[#allocation2 + $0x2a] sm:$0x1] }
 0x164   : > { %v651_v0 = vrot.slane %v2666_v19, 5  ;;  %v990_v3 = vsel %vm526_vm9, %v989_v50, %v988_v25  ;;  %v918_v9 = vsel %vm517_vm6, %v917_v41, %v916_v1  ;;  %v653_v60 = vrot.slane %v2677_v55, 4  ;;  %v3185_v55 = vld [vmem:[#allocation23_spill] sm:$0xff]  ;;  %v3193_v50 = vld [vmem:[#allocation25_spill] sm:$0xff]  ;;  %v3196_v31 = vld [vmem:[#allocation22_spill] sm:$0xff] }
 0x165   : > { %v655_v24 = vrot.slane %v2685_v23, 3  ;;  %992 = vst.msk [vmem:[%s2846_s6 + $0x38] sm:$0xff] %vm474_vm2, %v990_v3  ;;  %v920_v12 = vsel %vm520_vm7, %v919_v54, %v918_v9  ;;  %v657_v11 = vrot.slane %v2693_v56, 2  ;;  %v659_v26 = vrot.slane %v3182_v27, 1  ;;  %v3187_v56 = vld [vmem:[#allocation29_spill] sm:$0xff]  ;;  %v3197_v41 = vld [vmem:[#allocation34_spill] sm:$0xff] }
 0x166   : > { %v648_v19 = vsel %vm508_vm3, %v647_v39, %v3183_v35  ;;  %v922_v52 = vsel %vm523_vm8, %v921_v44, %v920_v12  ;;  %v507_v13 = vrot.slane %v3184_v6, 7  ;;  %v510_v4 = vrot.slane %v3185_v55, 6  ;;  %v1524_v44 = vld [vmem:[#allocation2 + $0x1a] sm:$0x1]  ;;  %v3200_v25 = vld [vmem:[#allocation24_spill] sm:$0xff] }
 0x167   : > { %v650_v47 = vsel %vm511_vm4, %v649_v59, %v648_v19  ;;  %v924_v23 = vsel %vm526_vm9, %v923_v33, %v922_v52  ;;  %v513_v40 = vrot.slane %v3186_v14, 5  ;;  %v516_v43 = vrot.slane %v3187_v56, 4  ;;  %v3199_v33 = vld [vmem:[#allocation17_spill] sm:$0xff]  ;;  %v1526_v59 = vld [vmem:[#allocation2 + $0x3a] sm:$0x1] }
 0x168   : > { %v652_v63 = vsel %vm514_vm5, %v651_v0, %v650_v47  ;;  %926 = vst.msk [vmem:[%s2846_s6 + $0x30] sm:$0xff] %vm474_vm2, %v924_v23  ;;  %v519_v62 = vrot.slane %v3188_v57, 3  ;;  %v522_v22 = vrot.slane %v3189_v37, 2  ;;  %v525_v58 = vrot.slane %v3190_v49, 1  ;;  %v1527_v0 = vld [vmem:[#allocation2 + $0x4a] sm:$0x1] }
 0x169   : > { %v654_v17 = vsel %vm517_vm6, %v653_v60, %v652_v63  ;;  %v509_v53 = vsel %vm508_vm3, %v507_v13, %v3191_v29  ;;  %v713_v20 = vrot.slane %v3192_v2, 7  ;;  %v715_v16 = vrot.slane %v3193_v50, 6  ;;  %v1528_v3 = vld [vmem:[#allocation2 + $0x5a] sm:$0x1]  ;;  %v1523_v27 = vld [vmem:[#allocation2 + $0xa] sm:$0x1] }
 0x16a   : > { %v656_v36 = vsel %vm520_vm7, %v655_v24, %v654_v17  ;;  %v512_v7 = vsel %vm511_vm4, %v510_v4, %v509_v53  ;;  %v717_v5 = vrot.slane %v3194_v42, 5  ;;  %v719_v21 = vrot.slane %v3195_v10, 4  ;;  %v3201_v24 = vld [vmem:[#allocation27_spill] sm:$0xff]  ;;  %v3202_v12 = vld [vmem:[#allocation30_spill] sm:$0xff]  ;;  %v3203_v47 = vld [vmem:[#allocation20_spill] sm:$0xff] }
 0x16b   : > { %v658_v61 = vsel %vm523_vm8, %v657_v11, %v656_v36  ;;  %v515_v30 = vsel %vm514_vm5, %v513_v40, %v512_v7  ;;  %v714_v15 = vsel %vm508_vm3, %v713_v20, %v3196_v31  ;;  %v721_v46 = vrot.slane %v3197_v41, 3  ;;  %v2935_v35 = vld [vmem:[#allocation2 + $0x7a] sm:$0x1]  ;;  %v3204_v13 = vld [vmem:[#allocation33_spill] sm:$0xff]  ;;  %v1458_v4 = vld [vmem:[#allocation2 + $0x18] sm:$0x1] }
 0x16c   : > { %v660_v28 = vsel %vm526_vm9, %v659_v26, %v658_v61  ;;  %v518_v38 = vsel %vm517_vm6, %v516_v43, %v515_v30  ;;  %v716_v45 = vsel %vm511_vm4, %v715_v16, %v714_v15  ;;  %v723_v54 = vrot.slane %v3198_v18, 2  ;;  %v1529_v26 = vld [vmem:[#allocation2 + $0x6a] sm:$0x1]  ;;  %v1459_v23 = vld [vmem:[#allocation2 + $0x28] sm:$0x1]  ;;  %v3206_v43 = vld [vmem:[#allocation39_spill] sm:$0xff] }
 0x16d   : > { %662 = vst.msk [vmem:[%s2846_s6 + $0x10] sm:$0xff] %vm474_vm2, %v660_v28  ;;  %v725_v8 = vrot.slane %v2708_v32, 1  ;;  %v521_v34 = vsel %vm520_vm7, %v519_v62, %v518_v38  ;;  %v718_v51 = vsel %vm514_vm5, %v717_v5, %v716_v45  ;;  %v581_v39 = vrot.slane %v3199_v33, 7  ;;  %v3205_v40 = vld [vmem:[#allocation36_spill] sm:$0xff]  ;;  %v1460_v57 = vld [vmem:[#allocation2 + $0x38] sm:$0x1] }
 0x16e   : > { %v583_v1 = vrot.slane %v3200_v25, 6  ;;  %v524_v9 = vsel %vm523_vm8, %v522_v22, %v521_v34  ;;  %v720_v60 = vsel %vm517_vm6, %v719_v21, %v718_v51  ;;  %v585_v32 = vrot.slane %v3201_v24, 5  ;;  %v1461_v62 = vld [vmem:[#allocation2 + $0x48] sm:$0x1]  ;;  %v1462_v29 = vld [vmem:[#allocation2 + $0x58] sm:$0x1] }
 0x16f   : > { %v587_v11 = vrot.slane %v3202_v12, 4  ;;  %v527_v19 = vsel %vm526_vm9, %v525_v58, %v524_v9  ;;  %v722_v52 = vsel %vm520_vm7, %v721_v46, %v720_v60  ;;  %v582_v6 = vsel %vm508_vm3, %v581_v39, %v3203_v47  ;;  %v1457_v36 = vld [vmem:[#allocation2 + $0x8] sm:$0x1]  ;;  %v1464_v61 = vld [vmem:[#allocation2 + $0x78] sm:$0x1] }
 0x170   : > { %v589_v55 = vrot.slane %v3204_v13, 3  ;;  %529 = vst.msk [vmem:[%s2846_s6] sm:$0xff] %vm474_vm2, %v527_v19  ;;  %v724_v63 = vsel %vm523_vm8, %v723_v54, %v722_v52  ;;  %v584_v14 = vsel %vm511_vm4, %v583_v1, %v582_v6  ;;  %v591_v56 = vrot.slane %v3205_v40, 2  ;;  %v1463_v53 = vld [vmem:[#allocation2 + $0x68] sm:$0x1] }
 0x171   : > { %v593_v17 = vrot.slane %v3206_v43, 1  ;;  %v726_v37 = vsel %vm526_vm9, %v725_v8, %v724_v63  ;;  %v586_v22 = vsel %vm514_vm5, %v585_v32, %v584_v14  ;;  %v1539_v49 = vrot.slane %v1524_v44, 7  ;;  %v1260_v7 = vld [vmem:[#allocation2 + $0x12] sm:$0x1]  ;;  %v1261_v28 = vld [vmem:[#allocation2 + $0x22] sm:$0x1] }
 0x172   : > { %v1541_v58 = vrot.slane %v1525_v48, 6  ;;  %728 = vst.msk [vmem:[%s2846_s6 + $0x18] sm:$0xff] %vm474_vm2, %v726_v37  ;;  %v588_v2 = vsel %vm517_vm6, %v587_v11, %v586_v22  ;;  %v1543_v20 = vrot.slane %v1526_v59, 5  ;;  %v1545_v50 = vrot.slane %v1527_v0, 4  ;;  %v1262_v30 = vld [vmem:[#allocation2 + $0x32] sm:$0x1] }
 0x173   : > { %v1547_v16 = vrot.slane %v1528_v3, 3  ;;  %v590_v42 = vsel %vm520_vm7, %v589_v55, %v588_v2  ;;  %v1540_v5 = vsel %vm508_vm3, %v1539_v49, %v1523_v27  ;;  %v1549_v10 = vrot.slane %v1529_v26, 2  ;;  %v1263_v38 = vld [vmem:[#allocation2 + $0x42] sm:$0x1]  ;;  %v1264_v45 = vld [vmem:[#allocation2 + $0x52] sm:$0x1] }
 0x174   : > { %v1551_v21 = vrot.slane %v2935_v35, 1  ;;  %v592_v31 = vsel %vm523_vm8, %v591_v56, %v590_v42  ;;  %v1542_v15 = vsel %vm511_vm4, %v1541_v58, %v1540_v5  ;;  %v1473_v41 = vrot.slane %v1458_v4, 7  ;;  %v1265_v48 = vld [vmem:[#allocation2 + $0x62] sm:$0x1]  ;;  %v2960_v34 = vld [vmem:[#allocation2 + $0x72] sm:$0x1] }
 0x175   : > { %v1475_v46 = vrot.slane %v1459_v23, 6  ;;  %v594_v18 = vsel %vm526_vm9, %v593_v17, %v592_v31  ;;  %v1544_v54 = vsel %vm514_vm5, %v1543_v20, %v1542_v15  ;;  %v1477_v8 = vrot.slane %v1460_v57, 5  ;;  %v1259_v1 = vld [vmem:[#allocation2 + $0x2] sm:$0x1]  ;;  %v1194_v59 = vld [vmem:[#allocation2 + $0x10] sm:$0x1] }
 0x176   : > { %v1479_v44 = vrot.slane %v1461_v62, 4  ;;  %596 = vst.msk [vmem:[%s2846_s6 + $0x8] sm:$0xff] %vm474_vm2, %v594_v18  ;;  %v1546_v51 = vsel %vm517_vm6, %v1545_v50, %v1544_v54  ;;  %v1474_v33 = vsel %vm508_vm3, %v1473_v41, %v1457_v36  ;;  %v1481_v39 = vrot.slane %v1462_v29, 3  ;;  %v1195_v24 = vld [vmem:[#allocation2 + $0x20] sm:$0x1] }
 0x177   : > { %v1483_v25 = vrot.slane %v1463_v53, 2  ;;  %v1548_v0 = vsel %vm520_vm7, %v1547_v16, %v1546_v51  ;;  %v1476_v3 = vsel %vm511_vm4, %v1475_v46, %v1474_v33  ;;  %v1485_v9 = vrot.slane %v1464_v61, 1  ;;  %v1196_v32 = vld [vmem:[#allocation2 + $0x30] sm:$0x1]  ;;  %v1197_v35 = vld [vmem:[#allocation2 + $0x40] sm:$0x1] }
 0x178   : > { %v1275_v60 = vrot.slane %v1260_v7, 7  ;;  %v1550_v12 = vsel %vm523_vm8, %v1549_v10, %v1548_v0  ;;  %v1478_v11 = vsel %vm514_vm5, %v1477_v8, %v1476_v3  ;;  %v1277_v27 = vrot.slane %v1261_v28, 6  ;;  %v1198_v19 = vld [vmem:[#allocation2 + $0x50] sm:$0x1]  ;;  %v1199_v55 = vld [vmem:[#allocation2 + $0x60] sm:$0x1] }
 0x179   : > { %v1279_v26 = vrot.slane %v1262_v30, 5  ;;  %v1552_v52 = vsel %vm526_vm9, %v1551_v21, %v1550_v12  ;;  %v1480_v47 = vsel %vm517_vm6, %v1479_v44, %v1478_v11  ;;  %v1281_v6 = vrot.slane %v1263_v38, 4  ;;  %v2972_v4 = vld [vmem:[#allocation2 + $0x70] sm:$0x1]  ;;  %v1193_v56 = vld [vmem:[#allocation2] sm:$0x1] }
 0x17a   : > { %v1283_v13 = vrot.slane %v1264_v45, 3  ;;  %1554 = vst.msk [vmem:[%s2846_s6 + $0x68] sm:$0xff] %vm474_vm2, %v1552_v52  ;;  %v1482_v23 = vsel %vm520_vm7, %v1481_v39, %v1480_v47  ;;  %v1285_v63 = vrot.slane %v1265_v48, 2  ;;  %v1287_v14 = vrot.slane %v2960_v34, 1  ;;  %v1392_v43 = vld [vmem:[#allocation2 + $0x16] sm:$0x1] }
 0x17b   : > { %v1276_v40 = vsel %vm508_vm3, %v1275_v60, %v1259_v1  ;;  %v1484_v17 = vsel %vm523_vm8, %v1483_v25, %v1482_v23  ;;  %v1209_v62 = vrot.slane %v1194_v59, 7  ;;  %v1211_v37 = vrot.slane %v1195_v24, 6  ;;  %v1391_v22 = vld [vmem:[#allocation2 + $0x6] sm:$0x1]  ;;  %v1394_v58 = vld [vmem:[#allocation2 + $0x36] sm:$0x1] }
 0x17c   : > { %v1278_v57 = vsel %vm511_vm4, %v1277_v27, %v1276_v40  ;;  %v1393_v49 = vld [vmem:[#allocation2 + $0x26] sm:$0x1]  ;;  %v1486_v36 = vsel %vm526_vm9, %v1485_v9, %v1484_v17  ;;  %v1213_v53 = vrot.slane %v1196_v32, 5  ;;  %v1215_v2 = vrot.slane %v1197_v35, 4  ;;  %v1396_v50 = vld [vmem:[#allocation2 + $0x56] sm:$0x1] }
 0x17d   : > { %v1280_v29 = vsel %vm514_vm5, %v1279_v26, %v1278_v57  ;;  %v1395_v20 = vld [vmem:[#allocation2 + $0x46] sm:$0x1]  ;;  %1488 = vst.msk [vmem:[%s2846_s6 + $0x60] sm:$0xff] %vm474_vm2, %v1486_v36  ;;  %v1217_v61 = vrot.slane %v1198_v19, 3  ;;  %v1219_v7 = vrot.slane %v1199_v55, 2  ;;  %v1221_v42 = vrot.slane %v2972_v4, 1 }
 0x17e   : > { %v1282_v16 = vsel %vm517_vm6, %v1281_v6, %v1280_v29  ;;  %v1397_v5 = vld [vmem:[#allocation2 + $0x66] sm:$0x1]  ;;  %v1210_v21 = vsel %vm508_vm3, %v1209_v62, %v1193_v56  ;;  %v1398_v28 = vld [vmem:[#allocation2 + $0x76] sm:$0x1]  ;;  %v1407_v30 = vrot.slane %v1392_v43, 7  ;;  %v1409_v31 = vrot.slane %v1393_v49, 6 }
 0x17f   : > { %v1284_v10 = vsel %vm520_vm7, %v1283_v13, %v1282_v16  ;;  %v1326_v15 = vld [vmem:[#allocation2 + $0x14] sm:$0x1]  ;;  %v1212_v46 = vsel %vm511_vm4, %v1211_v37, %v1210_v21  ;;  %v1411_v38 = vrot.slane %v1394_v58, 5  ;;  %v1413_v45 = vrot.slane %v1395_v20, 4  ;;  %v1325_v18 = vld [vmem:[#allocation2 + $0x4] sm:$0x1] }
 0x180   : > { %v1286_v41 = vsel %vm523_vm8, %v1285_v63, %v1284_v10  ;;  %v1327_v54 = vld [vmem:[#allocation2 + $0x24] sm:$0x1]  ;;  %v1328_v8 = vld [vmem:[#allocation2 + $0x34] sm:$0x1]  ;;  %v1214_v48 = vsel %vm514_vm5, %v1213_v53, %v1212_v46  ;;  %v1408_v34 = vsel %vm508_vm3, %v1407_v30, %v1391_v22  ;;  %v1415_v51 = vrot.slane %v1396_v50, 3 }
 0x181   : > { %v1288_v44 = vsel %vm526_vm9, %v1287_v14, %v1286_v41  ;;  %v1329_v33 = vld [vmem:[#allocation2 + $0x44] sm:$0x1]  ;;  %v1330_v39 = vld [vmem:[#allocation2 + $0x54] sm:$0x1]  ;;  %v1216_v25 = vsel %vm517_vm6, %v1215_v2, %v1214_v48  ;;  %v1410_v1 = vsel %vm511_vm4, %v1409_v31, %v1408_v34  ;;  %v1417_v59 = vrot.slane %v1397_v5, 2 }
 0x182   : > { %1290 = vst.msk [vmem:[%s2846_s6 + $0x48] sm:$0xff] %vm474_vm2, %v1288_v44  ;;  %v1419_v0 = vrot.slane %v1398_v28, 1  ;;  %v1331_v3 = vld [vmem:[#allocation2 + $0x64] sm:$0x1]  ;;  %v1332_v9 = vld [vmem:[#allocation2 + $0x74] sm:$0x1]  ;;  %v1218_v60 = vsel %vm520_vm7, %v1217_v61, %v1216_v25  ;;  %v1412_v24 = vsel %vm514_vm5, %v1411_v38, %v1410_v1 }
 0x183   : > { %v1341_v32 = vrot.slane %v1326_v15, 7  ;;  %v1343_v12 = vrot.slane %v1327_v54, 6  ;;  %v1656_v11 = vld [vmem:[#allocation2 + $0x1e] sm:$0x1]  ;;  %v1657_v27 = vld [vmem:[#allocation2 + $0x2e] sm:$0x1]  ;;  %v1220_v26 = vsel %vm523_vm8, %v1219_v7, %v1218_v60  ;;  %v1414_v35 = vsel %vm517_vm6, %v1413_v45, %v1412_v24 }
 0x184   : > { %v1345_v19 = vrot.slane %v1328_v8, 5  ;;  %v1347_v52 = vrot.slane %v1329_v33, 4  ;;  %v1655_v47 = vld [vmem:[#allocation2 + $0xe] sm:$0x1]  ;;  %v1658_v6 = vld [vmem:[#allocation2 + $0x3e] sm:$0x1]  ;;  %v1222_v55 = vsel %vm526_vm9, %v1221_v42, %v1220_v26  ;;  %v1416_v4 = vsel %vm520_vm7, %v1415_v51, %v1414_v35 }
 0x185   : > { %v1659_v13 = vld [vmem:[#allocation2 + $0x4e] sm:$0x1]  ;;  %v1342_v23 = vsel %vm508_vm3, %v1341_v32, %v1325_v18  ;;  %v1349_v63 = vrot.slane %v1330_v39, 3  ;;  %v1660_v14 = vld [vmem:[#allocation2 + $0x5e] sm:$0x1]  ;;  %1224 = vst.msk [vmem:[%s2846_s6 + $0x40] sm:$0xff] %vm474_vm2, %v1222_v55  ;;  %v1418_v56 = vsel %vm523_vm8, %v1417_v59, %v1416_v4  ;;  %v892_v32 = vpop.permute.xlu1 %891 }
 0x186   : > { %v1661_v40 = vld [vmem:[#allocation2 + $0x6e] sm:$0x1]  ;;  %v1344_v43 = vsel %vm511_vm4, %v1343_v12, %v1342_v23  ;;  %v1351_v17 = vrot.slane %v1331_v3, 2  ;;  %v1353_v57 = vrot.slane %v1332_v9, 1  ;;  %v1662_v62 = vld [vmem:[#allocation2 + $0x7e] sm:$0x1]  ;;  %v1420_v22 = vsel %vm526_vm9, %v1419_v0, %v1418_v56  ;;  %v826_v12 = vpop.permute.xlu0 %825 }
 0x187   : > { %v1590_v37 = vld [vmem:[#allocation2 + $0x1c] sm:$0x1]  ;;  %v1346_v49 = vsel %vm514_vm5, %v1345_v19, %v1344_v43  ;;  %v1671_v58 = vrot.slane %v1656_v11, 7  ;;  %v1673_v36 = vrot.slane %v1657_v27, 6  ;;  %v1591_v29 = vld [vmem:[#allocation2 + $0x2c] sm:$0x1] }
 0x188   : > { %v1592_v53 = vld [vmem:[#allocation2 + $0x3c] sm:$0x1]  ;;  %1422 = vst.msk [vmem:[%s2846_s6 + $0x58] sm:$0xff] %vm474_vm2, %v1420_v22  ;;  %v1348_v2 = vsel %vm517_vm6, %v1347_v52, %v1346_v49  ;;  %v1675_v20 = vrot.slane %v1658_v6, 5  ;;  %v1677_v50 = vrot.slane %v1659_v13, 4  ;;  %v1679_v16 = vrot.slane %v1660_v14, 3 }
 0x189   : > { %v1593_v61 = vld [vmem:[#allocation2 + $0x4c] sm:$0x1]  ;;  %v1350_v7 = vsel %vm520_vm7, %v1349_v63, %v1348_v2  ;;  %v1672_v42 = vsel %vm508_vm3, %v1671_v58, %v1655_v47  ;;  %v1681_v5 = vrot.slane %v1661_v40, 2  ;;  %v1683_v10 = vrot.slane %v1662_v62, 1  ;;  %v1594_v28 = vld [vmem:[#allocation2 + $0x5c] sm:$0x1]  ;;  %v1024_v11 = vpop.permute.xlu1 %1023 }
 0x18a   : > { %v1589_v21 = vld [vmem:[#allocation2 + $0xc] sm:$0x1]  ;;  %v1352_v30 = vsel %vm523_vm8, %v1351_v17, %v1350_v7  ;;  %v1674_v31 = vsel %vm511_vm4, %v1673_v36, %v1672_v42  ;;  %v1605_v41 = vrot.slane %v1590_v37, 7  ;;  %v1607_v46 = vrot.slane %v1591_v29, 6  ;;  %v1596_v18 = vld [vmem:[#allocation2 + $0x7c] sm:$0x1] }
 0x18b   : > { %v1595_v15 = vld [vmem:[#allocation2 + $0x6c] sm:$0x1]  ;;  %v1354_v38 = vsel %vm526_vm9, %v1353_v57, %v1352_v30  ;;  %v1676_v45 = vsel %vm514_vm5, %v1675_v20, %v1674_v31  ;;  %v1609_v54 = vrot.slane %v1592_v53, 5  ;;  %v1611_v8 = vrot.slane %v1593_v61, 4  ;;  %894 = vst.msk [vmem:[%s2846_s6 + $0x28] sm:$0xff] %vm563_vm10, %v892_v32  ;;  %828 = vst.msk [vmem:[%s2846_s6 + $0x20] sm:$0xff] %vm563_vm10, %v826_v12 }
 0x18c   : > { %1356 = vst.msk [vmem:[%s2846_s6 + $0x50] sm:$0xff] %vm474_vm2, %v1354_v38  ;;  %v1678_v44 = vsel %vm517_vm6, %v1677_v50, %v1676_v45  ;;  %v1606_v48 = vsel %vm508_vm3, %v1605_v41, %v1589_v21  ;;  %v1613_v34 = vrot.slane %v1594_v28, 3  ;;  %v1615_v39 = vrot.slane %v1595_v15, 2  ;;  %v958_v27 = vpop.permute.xlu0 %957 }
 0x18d   : > { %v1680_v51 = vsel %vm520_vm7, %v1679_v16, %v1678_v44  ;;  %v1608_v33 = vsel %vm511_vm4, %v1607_v46, %v1606_v48  ;;  %v1617_v59 = vrot.slane %v1596_v18, 1  ;;  %1026 = vst.msk [vmem:[%s2846_s6 + $0x38] sm:$0xff] %vm563_vm10, %v1024_v11  ;;  %960 = vst.msk [vmem:[%s2846_s6 + $0x30] sm:$0xff] %vm563_vm10, %v958_v27 }
 0x18e   : > { %v1682_v25 = vsel %vm523_vm8, %v1681_v5, %v1680_v51  ;;  %v1610_v1 = vsel %vm514_vm5, %v1609_v54, %v1608_v33 }
 0x18f   : > { %v1684_v0 = vsel %vm526_vm9, %v1683_v10, %v1682_v25  ;;  %v1612_v3 = vsel %vm517_vm6, %v1611_v8, %v1610_v1 }
 0x190   : > { %1686 = vst.msk [vmem:[%s2846_s6 + $0x78] sm:$0xff] %vm474_vm2, %v1684_v0  ;;  %v1614_v9 = vsel %vm520_vm7, %v1613_v34, %v1612_v3 }
 0x191   : > { %v1616_v60 = vsel %vm523_vm8, %v1615_v39, %v1614_v9 }
 0x192   : > { %v1618_v24 = vsel %vm526_vm9, %v1617_v59, %v1616_v60 }
 0x193   : > { %1620 = vst.msk [vmem:[%s2846_s6 + $0x70] sm:$0xff] %vm474_vm2, %v1618_v24 }
 0x1a0   : > { %v561_v35 = vpop.permute.xlu0 %560 }
 0x1a1   : > { %v694_v26 = vpop.permute.xlu1 %693  ;;  %564 = vst.msk [vmem:[%s2846_s6] sm:$0xff] %vm563_vm10, %v561_v35 }
 0x1a2   : > { %696 = vst.msk [vmem:[%s2846_s6 + $0x10] sm:$0xff] %vm563_vm10, %v694_v26 }
 0x1a8   : > { %v760_v19 = vpop.permute.xlu1 %759 }
 0x1a9   : > { %762 = vst.msk [vmem:[%s2846_s6 + $0x18] sm:$0xff] %vm563_vm10, %v760_v19 }
 0x1ad   : > { %v628_v52 = vpop.permute.xlu0 %627 }
 0x1ae   : > { %630 = vst.msk [vmem:[%s2846_s6 + $0x8] sm:$0xff] %vm563_vm10, %v628_v52 }
 0x1b2   : > { %v1586_v47 = vpop.permute.xlu1 %1585 }
 0x1b3   : > { %1588 = vst.msk [vmem:[%s2846_s6 + $0x68] sm:$0xff] %vm563_vm10, %v1586_v47 }
 0x1b5   : > { %v1520_v6 = vpop.permute.xlu0 %1519 }
 0x1b6   : > { %1522 = vst.msk [vmem:[%s2846_s6 + $0x60] sm:$0xff] %vm563_vm10, %v1520_v6 }
 0x1b9   : > { %v1322_v13 = vpop.permute.xlu1 %1321 }
 0x1ba   : > { %1324 = vst.msk [vmem:[%s2846_s6 + $0x48] sm:$0xff] %vm563_vm10, %v1322_v13 }
 0x1bd   : > { %v1256_v55 = vpop.permute.xlu0 %1255 }
 0x1be   : > { %1258 = vst.msk [vmem:[%s2846_s6 + $0x40] sm:$0xff] %vm563_vm10, %v1256_v55 }
 0x1c1   : > { %v1454_v4 = vpop.permute.xlu1 %1453 }
 0x1c2   : > { %1456 = vst.msk [vmem:[%s2846_s6 + $0x58] sm:$0xff] %vm563_vm10, %v1454_v4 }
 0x1c5   : > { %v1388_v23 = vpop.permute.xlu0 %1387 }
 0x1c6   : > { %1390 = vst.msk [vmem:[%s2846_s6 + $0x50] sm:$0xff] %vm563_vm10, %v1388_v23 }
 0x1c9   : > { %v1718_v63 = vpop.permute.xlu1 %1717 }
 0x1ca   : > { %1720 = vst.msk [vmem:[%s2846_s6 + $0x78] sm:$0xff] %vm563_vm10, %v1718_v63 }
 0x1cd   : > { %v1652_v14 = vpop.permute.xlu0 %1651 }
 0x1ce   : > { %1654 = vst.msk [vmem:[%s2846_s6 + $0x70] sm:$0xff] %vm563_vm10, %v1652_v14 }
 0x1cf   : > { %2093 = shalt.err (!%p2090_p10)
}
 0x1d0   : > { %s2094_s6 = scalar_lea.hbm %s3074_s17, 2048  ;;  %s2098_s9 = scalar_lea.hbm %s3133_s3, 32768 }
 0x1d1   : > { %p2095_p11 = scmp.ne.s32.totalorder %s3074_s17, %s2094_s6  ;;  %p2099_p0 = scmp.lt.s32.totalorder %s3074_s17, %s3133_s3 }
 0x1d2   : > { %p2100_p1 = scmp.lt.s32.totalorder %s2098_s9, %s2094_s6 }
 0x1d3   : > { %p2096_p12 = pnand %p2095_p11, %p2278_p4 }
 0x1d4   : > { %p2101_p2 = por %p2100_p1, %p2099_p0 }
 0x1d5   : > { %p2097_p13 = pneg %p2096_p12 }
 0x1d7   : > { %p2102_p3 = pnand %p2101_p2, %p2097_p13 }
 0x1d9   : > { %2105 = shalt.err (!%p2102_p3)
}
 0x1da   : > { %1992 = dma.vmem_to_hbm [thread:$0]  (%p2278_p4), %s1743_s27, 2048, %s3074_s17, %s1722_s16  }
 0x1db PF: > { %p1998_p5 = scmp.ge.s32.totalorder %s2188_s21, 2  ;;  %s1754_s26 = sand.u32 1, %s2152_s12  }
 0x1dc   : > { %s1755_s25 = scalar_lea.sflag [#allocation4], %s1754_s26 }
 0x1dd   : > { %p1995_p6 = pnand %p1998_p5, %p2287_p9 }
 0x1df   : > { %p1996_p7 = pneg %p1995_p6 }
 0x1e1   : > { %2147 = dma.done.wait (%p1996_p7), %s1755_s25, 2048  }
 0x1e2   : > { %2149 = vsyncadd (%p1996_p7), %s1755_s25, 4294965248  ;;  %s16_s21 = sadd.s32 1, %s2188_s21   ;;  %s3207_s4 = sld [smem:[#allocation6_spill]] }
 0x1e3   : > { %p13_p8 = scmp.ge.s32.totalorder %s16_s21, 18   ;;  %s3208_s12 = smov %s2156_s13 }
 0x1e4   : > { %s3209_s13 = smov %s2160_s14  ;;  %s3210_s14 = smov %s2297_s22 }
 0x1e5   : > { %s3211_s15 = smov %s2176_s18  ;;  %s3212_s16 = smov %s2180_s19 }
 0x1e6   : > { %s3213_s17 = smov %s2184_s20  ;;  %s3214_s18 = smov %s3220_s23 }
 0x1e7   : > { %s3215_s19 = smov %s3222_s24  ;;  %15 = sbr.rel (!%p13_p8) target bundleno = 6 (0x6), region = 71 }
 0x1e8   : > { %s3216_s20 = smov %s3207_s4 }
 0x1ec   :  { %1760 = vsyncpa [#allocation4], 1 }
 0x1ed   :  { %1762 = vsyncpa [#allocation4 + $0x1], 1 }

</bundles_post_ra>
